<compile_context>
chip_gen: v7x
topology: tpu7x:2x2x1
jax: 0.10.0
libtpu: 0.0.40
codegen_flags: <defaults>
</compile_context>

<pallas_src>
import functools

import jax
import jax.numpy as jnp
from jax.experimental import pallas as pl
from jax.experimental.pallas import tpu as pltpu


def _pick_tile(n, preferred):
    """Largest tile <= preferred dividing n; prefer multiples of 128, then 8."""
    if n <= preferred:
        return n
    for t in range(preferred, 127, -1):
        if n % t == 0 and t % 128 == 0:
            return t
    for t in range(preferred, 7, -1):
        if n % t == 0 and t % 8 == 0:
            return t
    # TODO(synk): pad N to a multiple of 128 (with kv masking) for awkward
    # sequence lengths instead of falling back to a full-length tile.
    return n


# ---------------------------------------------------------------------------
# Kernel 1: fused QKV projection, lane-dense (rt, 3E) output.
# ---------------------------------------------------------------------------
def _qkv_proj_kernel(x_ref, w_ref, b_ref, o_ref, *, compute_dtype):
    # x_ref: (rt, E) f32; w_ref: (E, 3E) compute_dtype; b_ref: (1, 3E) f32.
    x = x_ref[...].astype(compute_dtype)
    y = jnp.dot(x, w_ref[...], preferred_element_type=jnp.float32)
    o_ref[...] = (y + b_ref[...]).astype(o_ref.dtype)


# ---------------------------------------------------------------------------
# Kernel 2: flash attention (online softmax) + per-head fused output projection.
# Grid: (batch, q tiles, heads, kv tiles); heads & kv are reduction axes.
# ---------------------------------------------------------------------------
def _flash_mha_kernel(q_ref, k_ref, v_ref, wo_ref, bo_ref, o_ref,
                      m_s, l_s, ctx_s, proj_s, *, compute_dtype):
    h = pl.program_id(2)
    ki = pl.program_id(3)
    last_h = pl.num_programs(2) - 1
    last_k = pl.num_programs(3) - 1

    @pl.when(ki == 0)
    def _init_head_state():
        m_s[...] = jnp.full_like(m_s, -jnp.inf)
        l_s[...] = jnp.zeros_like(l_s)
        ctx_s[...] = jnp.zeros_like(ctx_s)

    @pl.when(jnp.logical_and(h == 0, ki == 0))
    def _init_proj():
        proj_s[...] = jnp.zeros_like(proj_s)

    q = q_ref[...]                                    # (tq, D), pre-scaled
    k = k_ref[...]                                    # (tk, D)

    # Scores: contract over D (no materialized transpose).
    s = jax.lax.dot_general(q, k, (((1,), (1,)), ((), ())),
                            preferred_element_type=jnp.float32)   # (tq, tk)

    m_prev = m_s[...]                                 # (tq, 1)
    m_new = jnp.maximum(m_prev, jnp.max(s, axis=-1, keepdims=True))
    alpha = jnp.exp(m_prev - m_new)                   # first step: exp(-inf)=0
    p = jnp.exp(s - m_new)                            # (tq, tk) f32

    l_s[...] = alpha * l_s[...] + jnp.sum(p, axis=-1, keepdims=True)
    ctx_s[...] = alpha * ctx_s[...] + jnp.dot(
        p.astype(compute_dtype), v_ref[...], preferred_element_type=jnp.float32)
    m_s[...] = m_new

    # TODO(synk): attention dropout (self.att_drop) omitted — eval-mode identity.

    @pl.when(ki == last_k)
    def _project_head():
        inv_l = pl.reciprocal(l_s[...], approx=True)   # (tq, 1), EUP slot
        ctx = (ctx_s[...] * inv_l).astype(compute_dtype)        # (tq, D)
        # Per-head slice of Wo (rows h*D:(h+1)*D) — no lane-axis concatenate.
        proj_s[...] += jnp.dot(ctx, wo_ref[...],
                               preferred_element_type=jnp.float32)

    @pl.when(jnp.logical_and(h == last_h, ki == last_k))
    def _write_out():
        o_ref[...] = (proj_s[...] + bo_ref[...]).astype(o_ref.dtype)


# ---------------------------------------------------------------------------
# Wrapper
# ---------------------------------------------------------------------------
def multi_head_attention(x, params, *, num_heads,
                         compute_dtype=jnp.bfloat16,
                         row_tile=None, q_tile=None, kv_tile=None,
                         vmem_limit_bytes=64 * 1024 * 1024):
    """x: (B, N, E) float32.  params: weights (E, E) (in, out) and biases (1, E)."""
    B, N, E = x.shape
    H = num_heads
    assert E % H == 0
    D = E // H

    # Tile sizes: keep projection matmul M-dims large (MXU-friendly), kv tiles
    # modest so the (tq, tk) f32 score/prob block stays near vreg residency.
    rt = row_tile or _pick_tile(N, 256)
    tq = q_tile or _pick_tile(N, 256)
    tk = kv_tile or _pick_tile(N, 128)

    # Fold the softmax scaling (sqrt(emb_size), per the PyTorch module) into
    # Q's weights/bias on the host — done once, not on the N x N score matrix.
    inv_scale = 1.0 / (E ** 0.5)
    wqkv = jnp.concatenate(
        [params["wq"] * inv_scale, params["wk"], params["wv"]],
        axis=1).astype(compute_dtype)                         # (E, 3E)
    bqkv = jnp.concatenate(
        [params["bq"] * inv_scale, params["bk"], params["bv"]],
        axis=1).astype(jnp.float32)                           # (1, 3E)
    wo_h = params["wo"].reshape(H, D, E).astype(compute_dtype)  # per-head rows
    bo = params["bo"].astype(jnp.float32)                     # (1, E)

    # ---- Pass 1: fused QKV projection, lane-dense (B, N, 3E) output.
    qkv_kernel = functools.partial(_qkv_proj_kernel, compute_dtype=compute_dtype)
    qkv = pl.pallas_call(
        qkv_kernel,
        out_shape=jax.ShapeDtypeStruct((B, N, 3 * E), compute_dtype),
        grid_spec=pltpu.PrefetchScalarGridSpec(
            num_scalar_prefetch=0,
            grid=(B, N // rt),
            in_specs=[
                pl.BlockSpec((pl.Squeezed(), rt, E), lambda b, r: (b, r, 0)),
                pl.BlockSpec((E, 3 * E), lambda b, r: (0, 0)),
                pl.BlockSpec((1, 3 * E), lambda b, r: (0, 0)),
            ],
            out_specs=pl.BlockSpec((pl.Squeezed(), rt, 3 * E),
                                   lambda b, r: (b, r, 0)),
        ),
        compiler_params=pltpu.CompilerParams(
            dimension_semantics=("parallel", "parallel"),
            vmem_limit_bytes=vmem_limit_bytes),
    )(x, wqkv, bqkv)

    # ---- Layout plumbing: (B, N, 3E) -> (B, 3H, N, D) head-major view.
    # Single bulk XLA transpose (wrapper side), so pass-2 windows are full-width
    # along the lane (D) axis and pass-1 stores stay lane-dense.
    qkv_hm = jnp.transpose(qkv.reshape(B, N, 3 * H, D), (0, 2, 1, 3))

    # ---- Pass 2: flash attention over (batch, q tiles, heads, kv tiles) with
    # the output projection fused into each head's last kv step.
    attn_kernel = functools.partial(_flash_mha_kernel, compute_dtype=compute_dtype)
    out = pl.pallas_call(
        attn_kernel,
        out_shape=jax.ShapeDtypeStruct((B, N, E), x.dtype),
        grid_spec=pltpu.PrefetchScalarGridSpec(
            num_scalar_prefetch=0,
            grid=(B, N // tq, H, N // tk),
            in_specs=[
                pl.BlockSpec((pl.Squeezed(), pl.Squeezed(), tq, D),
                             lambda b, qi, h, ki: (b, h, qi, 0)),          # Q head h
                pl.BlockSpec((pl.Squeezed(), pl.Squeezed(), tk, D),
                             lambda b, qi, h, ki: (b, H + h, ki, 0)),      # K head h
                pl.BlockSpec((pl.Squeezed(), pl.Squeezed(), tk, D),
                             lambda b, qi, h, ki: (b, 2 * H + h, ki, 0)),  # V head h
                pl.BlockSpec((pl.Squeezed(), D, E),
                             lambda b, qi, h, ki: (h, 0, 0)),              # Wo[h]
                pl.BlockSpec((1, E), lambda b, qi, h, ki: (0, 0)),         # bo
            ],
            out_specs=pl.BlockSpec((pl.Squeezed(), tq, E),
                                   lambda b, qi, h, ki: (b, qi, 0)),
            scratch_shapes=[
                pltpu.VMEM((tq, 1), jnp.float32),   # running max
                pltpu.VMEM((tq, 1), jnp.float32),   # running sum
                pltpu.VMEM((tq, D), jnp.float32),   # per-head context acc
                pltpu.VMEM((tq, E), jnp.float32),   # fused projection acc
            ],
        ),
        compiler_params=pltpu.CompilerParams(
            dimension_semantics=("parallel", "parallel", "arbitrary", "arbitrary"),
            vmem_limit_bytes=vmem_limit_bytes),
    )(qkv_hm, qkv_hm, qkv_hm, wo_h, bo)
    return out


# ---------------------------------------------------------------------------
# Plain-JAX reference (eval mode, no mask) and test harness.
# ---------------------------------------------------------------------------
def _reference(x, params, *, num_heads):
    B, N, E = x.shape
    D = E // num_heads

    def lin(x, w, b):
        return x @ w + b

    q = lin(x, params["wq"], params["bq"]).reshape(B, N, num_heads, D).transpose(0, 2, 1, 3)
    k = lin(x, params["wk"], params["bk"]).reshape(B, N, num_heads, D).transpose(0, 2, 1, 3)
    v = lin(x, params["wv"], params["bv"]).reshape(B, N, num_heads, D).transpose(0, 2, 1, 3)
    energy = jnp.einsum("bhqd,bhkd->bhqk", q, k)
    att = jax.nn.softmax(energy / (E ** 0.5), axis=-1)
    out = jnp.einsum("bhal,bhlv->bhav", att, v)
    out = out.transpose(0, 2, 1, 3).reshape(B, N, E)
    return lin(out, params["wo"], params["bo"])


def _init_params(key, emb_size):
    ks = jax.random.split(key, 8)
    scale = 1.0 / (emb_size ** 0.5)

    def w(k):
        return jax.random.uniform(k, (emb_size, emb_size), jnp.float32, -scale, scale)

    def b(k):
        return jax.random.uniform(k, (1, emb_size), jnp.float32, -scale, scale)

    return {
        "wq": w(ks[0]), "bq": b(ks[1]),
        "wk": w(ks[2]), "bk": b(ks[3]),
        "wv": w(ks[4]), "bv": b(ks[5]),
        "wo": w(ks[6]), "bo": b(ks[7]),
    }


if __name__ == "__main__":
    B, N, E, H = 2, 16, 32, 4  # batch, seq, emb_size, num_heads
    key = jax.random.PRNGKey(0)
    kx, kp = jax.random.split(key)
    x = jax.random.normal(kx, (B, N, E), jnp.float32)
    params = _init_params(kp, E)

    mha = jax.jit(functools.partial(multi_head_attention, num_heads=H))
    out = jax.block_until_ready(mha(x, params))

    ref = _reference(x, params, num_heads=H)
    assert out.shape == (B, N, E)
    err = float(jnp.max(jnp.abs(out - ref)))
    # bf16 MXU operands + approx reciprocal -> loosened tolerance vs f32 ref.
    assert err < 5e-2, f"mismatch vs reference: max abs err = {err}"
    print("KERNEL_OK")
</pallas_src>

<mosaic_0001>
module attributes {stable_mosaic.version = 11 : i64} {
  func.func @_qkv_proj_kernel(%arg0: i32, %arg1: i32, %arg2: memref<1x16x32xf32, #tpu.memory_space<vmem>>, %arg3: memref<32x96xbf16, #tpu.memory_space<vmem>>, %arg4: memref<1x96xf32, #tpu.memory_space<vmem>>, %arg5: memref<1x16x96xbf16, #tpu.memory_space<vmem>>) attributes {dimension_semantics = [#tpu.dimension_semantics<parallel>, #tpu.dimension_semantics<parallel>], iteration_bounds = array<i64: 2, 1>, scalar_prefetch = 0 : i64, scratch_operands = 0 : i64, tpu.core_type = #tpu.core_type<tc>, window_params = [{transform_indices = @transform_0, window_bounds = array<i64: 1, 16, 32>}, {pipeline_mode = #tpu.pipeline_mode<synchronous>, transform_indices = @transform_1, window_bounds = array<i64: 32, 96>}, {pipeline_mode = #tpu.pipeline_mode<synchronous>, transform_indices = @transform_2, window_bounds = array<i64: 1, 96>}, {transform_indices = @transform_3, window_bounds = array<i64: 1, 16, 96>}]} {
    %c0 = arith.constant 0 : index
    %c0_0 = arith.constant 0 : index
    %c0_1 = arith.constant 0 : index
    %0 = vector.load %arg2[%c0, %c0_0, %c0_1] : memref<1x16x32xf32, #tpu.memory_space<vmem>>, vector<1x16x32xf32>
    %1 = vector.shape_cast %0 : vector<1x16x32xf32> to vector<16x32xf32>
    %2 = arith.truncf %1 : vector<16x32xf32> to vector<16x32xbf16>
    %c0_2 = arith.constant 0 : index
    %c0_3 = arith.constant 0 : index
    %3 = vector.load %arg3[%c0_2, %c0_3] : memref<32x96xbf16, #tpu.memory_space<vmem>>, vector<32x96xbf16>
    %cst = arith.constant dense<0.000000e+00> : vector<16x96xf32>
    %4 = tpu.matmul %2, %3, %cst {dimension_numbers = #tpu.dot_dimension_numbers<[1], [0], [0], [1], [0, 0, 1, 1], [], []>} : vector<16x32xbf16>, vector<32x96xbf16>, vector<16x96xf32> -> vector<16x96xf32>
    %c0_4 = arith.constant 0 : index
    %c0_5 = arith.constant 0 : index
    %5 = vector.load %arg4[%c0_4, %c0_5] : memref<1x96xf32, #tpu.memory_space<vmem>>, vector<1x96xf32>
    %6 = vector.broadcast %5 : vector<1x96xf32> to vector<16x96xf32>
    %7 = arith.addf %4, %6 : vector<16x96xf32>
    %8 = arith.truncf %7 : vector<16x96xf32> to vector<16x96xbf16>
    %c0_6 = arith.constant 0 : index
    %c0_7 = arith.constant 0 : index
    %c0_8 = arith.constant 0 : index
    %9 = vector.load %arg5[%c0_6, %c0_7, %c0_8] : memref<1x16x96xbf16, #tpu.memory_space<vmem>>, vector<1x16x96xbf16>
    %10 = vector.shape_cast %9 : vector<1x16x96xbf16> to vector<16x96xbf16>
    %11 = vector.shape_cast %8 : vector<16x96xbf16> to vector<1x16x96xbf16>
    tpu.vector_store %arg5[%c0_6, %c0_7, %c0_8], %11 {strides = array<i32>} : memref<1x16x96xbf16, #tpu.memory_space<vmem>>, vector<1x16x96xbf16>,
    return
  }
  func.func @transform_0(%arg0: i32, %arg1: i32) -> (i32, i32, i32) {
    %c0_i32 = arith.constant 0 : i32
    %c0_i32_0 = arith.constant 0 : i32
    return %arg0, %arg1, %c0_i32 : i32, i32, i32
  }
  func.func @transform_1(%arg0: i32, %arg1: i32) -> (i32, i32) {
    %c0_i32 = arith.constant 0 : i32
    %c0_i32_0 = arith.constant 0 : i32
    %c0_i32_1 = arith.constant 0 : i32
    return %c0_i32, %c0_i32_0 : i32, i32
  }
  func.func @transform_2(%arg0: i32, %arg1: i32) -> (i32, i32) {
    %c0_i32 = arith.constant 0 : i32
    %c0_i32_0 = arith.constant 0 : i32
    %c0_i32_1 = arith.constant 0 : i32
    return %c0_i32, %c0_i32_0 : i32, i32
  }
  func.func @transform_3(%arg0: i32, %arg1: i32) -> (i32, i32, i32) {
    %c0_i32 = arith.constant 0 : i32
    %c0_i32_0 = arith.constant 0 : i32
    return %arg0, %arg1, %c0_i32 : i32, i32, i32
  }
}

module attributes {stable_mosaic.version = 11 : i64} {
  func.func @_flash_mha_kernel(%arg0: i32, %arg1: i32, %arg2: i32, %arg3: i32, %arg4: memref<1x1x16x8xbf16, #tpu.memory_space<vmem>>, %arg5: memref<1x1x16x8xbf16, #tpu.memory_space<vmem>>, %arg6: memref<1x1x16x8xbf16, #tpu.memory_space<vmem>>, %arg7: memref<1x8x32xbf16, #tpu.memory_space<vmem>>, %arg8: memref<1x32xf32, #tpu.memory_space<vmem>>, %arg9: memref<1x16x32xf32, #tpu.memory_space<vmem>>, %arg10: memref<16x1xf32, #tpu.memory_space<vmem>>, %arg11: memref<16x1xf32, #tpu.memory_space<vmem>>, %arg12: memref<16x8xf32, #tpu.memory_space<vmem>>, %arg13: memref<16x32xf32, #tpu.memory_space<vmem>>) attributes {dimension_semantics = [#tpu.dimension_semantics<parallel>, #tpu.dimension_semantics<parallel>, #tpu.dimension_semantics<arbitrary>, #tpu.dimension_semantics<arbitrary>], iteration_bounds = array<i64: 2, 1, 4, 1>, scalar_prefetch = 0 : i64, scratch_operands = 4 : i64, tpu.core_type = #tpu.core_type<tc>, window_params = [{transform_indices = @transform_0, window_bounds = array<i64: 1, 1, 16, 8>}, {transform_indices = @transform_1, window_bounds = array<i64: 1, 1, 16, 8>}, {transform_indices = @transform_2, window_bounds = array<i64: 1, 1, 16, 8>}, {transform_indices = @transform_3, window_bounds = array<i64: 1, 8, 32>}, {pipeline_mode = #tpu.pipeline_mode<synchronous>, transform_indices = @transform_4, window_bounds = array<i64: 1, 32>}, {transform_indices = @transform_5, window_bounds = array<i64: 1, 16, 32>}]} {
    %c0_i32 = arith.constant 0 : i32
    %0 = arith.cmpi eq, %arg3, %c0_i32 : i32
    %1 = arith.extui %0 : i1 to i32
    %c0_i32_0 = arith.constant 0 : i32
    %2 = arith.cmpi ne, %1, %c0_i32_0 : i32
    scf.if %2 {
      %cst_34 = arith.constant 0xFF800000 : f32
      %46 = vector.broadcast %cst_34 : f32 to vector<16x1xf32>
      %c0_35 = arith.constant 0 : index
      %c0_36 = arith.constant 0 : index
      %47 = vector.load %arg10[%c0_35, %c0_36] : memref<16x1xf32, #tpu.memory_space<vmem>>, vector<16x1xf32>
      tpu.vector_store %arg10[%c0_35, %c0_36], %46 {strides = array<i32>} : memref<16x1xf32, #tpu.memory_space<vmem>>, vector<16x1xf32>,
      %cst_37 = arith.constant 0.000000e+00 : f32
      %48 = vector.broadcast %cst_37 : f32 to vector<16x1xf32>
      %c0_38 = arith.constant 0 : index
      %c0_39 = arith.constant 0 : index
      %49 = vector.load %arg11[%c0_38, %c0_39] : memref<16x1xf32, #tpu.memory_space<vmem>>, vector<16x1xf32>
      tpu.vector_store %arg11[%c0_38, %c0_39], %48 {strides = array<i32>} : memref<16x1xf32, #tpu.memory_space<vmem>>, vector<16x1xf32>,
      %cst_40 = arith.constant 0.000000e+00 : f32
      %50 = vector.broadcast %cst_40 : f32 to vector<16x8xf32>
      %c0_41 = arith.constant 0 : index
      %c0_42 = arith.constant 0 : index
      %51 = vector.load %arg12[%c0_41, %c0_42] : memref<16x8xf32, #tpu.memory_space<vmem>>, vector<16x8xf32>
      tpu.vector_store %arg12[%c0_41, %c0_42], %50 {strides = array<i32>} : memref<16x8xf32, #tpu.memory_space<vmem>>, vector<16x8xf32>,
    } else {
    }
    %c0_i32_1 = arith.constant 0 : i32
    %3 = arith.cmpi eq, %arg2, %c0_i32_1 : i32
    %c0_i32_2 = arith.constant 0 : i32
    %4 = arith.cmpi eq, %arg3, %c0_i32_2 : i32
    %5 = arith.andi %3, %4 : i1
    %6 = arith.extui %5 : i1 to i32
    %c0_i32_3 = arith.constant 0 : i32
    %7 = arith.cmpi ne, %6, %c0_i32_3 : i32
    scf.if %7 {
      %cst_34 = arith.constant 0.000000e+00 : f32
      %46 = vector.broadcast %cst_34 : f32 to vector<16x32xf32>
      %c0_35 = arith.constant 0 : index
      %c0_36 = arith.constant 0 : index
      %47 = vector.load %arg13[%c0_35, %c0_36] : memref<16x32xf32, #tpu.memory_space<vmem>>, vector<16x32xf32>
      tpu.vector_store %arg13[%c0_35, %c0_36], %46 {strides = array<i32>} : memref<16x32xf32, #tpu.memory_space<vmem>>, vector<16x32xf32>,
    } else {
    }
    %c0 = arith.constant 0 : index
    %c0_4 = arith.constant 0 : index
    %c0_5 = arith.constant 0 : index
    %c0_6 = arith.constant 0 : index
    %8 = vector.load %arg4[%c0, %c0_4, %c0_5, %c0_6] : memref<1x1x16x8xbf16, #tpu.memory_space<vmem>>, vector<1x1x16x8xbf16>
    %9 = vector.shape_cast %8 : vector<1x1x16x8xbf16> to vector<16x8xbf16>
    %c0_7 = arith.constant 0 : index
    %c0_8 = arith.constant 0 : index
    %c0_9 = arith.constant 0 : index
    %c0_10 = arith.constant 0 : index
    %10 = vector.load %arg5[%c0_7, %c0_8, %c0_9, %c0_10] : memref<1x1x16x8xbf16, #tpu.memory_space<vmem>>, vector<1x1x16x8xbf16>
    %11 = vector.shape_cast %10 : vector<1x1x16x8xbf16> to vector<16x8xbf16>
    %cst = arith.constant dense<0.000000e+00> : vector<16x16xf32>
    %12 = tpu.matmul %9, %11, %cst {dimension_numbers = #tpu.dot_dimension_numbers<[1], [1], [0], [0], [0, 0, 1, 0], [], []>} : vector<16x8xbf16>, vector<16x8xbf16>, vector<16x16xf32> -> vector<16x16xf32>
    %c0_11 = arith.constant 0 : index
    %c0_12 = arith.constant 0 : index
    %13 = vector.load %arg10[%c0_11, %c0_12] : memref<16x1xf32, #tpu.memory_space<vmem>>, vector<16x1xf32>
    %cst_13 = arith.constant dense<0xFF800000> : vector<16xf32>
    %14 = vector.multi_reduction <maximumf>, %12, %cst_13 [1] : vector<16x16xf32> to vector<16xf32>
    %15 = vector.shape_cast %14 : vector<16xf32> to vector<16x1xf32>
    %16 = arith.maximumf %13, %15 : vector<16x1xf32>
    %17 = arith.subf %13, %16 : vector<16x1xf32>
    %18 = math.exp %17 : vector<16x1xf32>
    %19 = vector.broadcast %16 : vector<16x1xf32> to vector<16x16xf32>
    %20 = arith.subf %12, %19 : vector<16x16xf32>
    %21 = math.exp %20 : vector<16x16xf32>
    %c0_14 = arith.constant 0 : index
    %c0_15 = arith.constant 0 : index
    %22 = vector.load %arg11[%c0_14, %c0_15] : memref<16x1xf32, #tpu.memory_space<vmem>>, vector<16x1xf32>
    %23 = arith.mulf %18, %22 : vector<16x1xf32>
    %cst_16 = arith.constant dense<0.000000e+00> : vector<16xf32>
    %24 = vector.multi_reduction <add>, %21, %cst_16 [1] : vector<16x16xf32> to vector<16xf32>
    %25 = vector.shape_cast %24 : vector<16xf32> to vector<16x1xf32>
    %26 = arith.addf %23, %25 : vector<16x1xf32>
    %c0_17 = arith.constant 0 : index
    %c0_18 = arith.constant 0 : index
    %27 = vector.load %arg11[%c0_17, %c0_18] : memref<16x1xf32, #tpu.memory_space<vmem>>, vector<16x1xf32>
    tpu.vector_store %arg11[%c0_17, %c0_18], %26 {strides = array<i32>} : memref<16x1xf32, #tpu.memory_space<vmem>>, vector<16x1xf32>,
    %c0_19 = arith.constant 0 : index
    %c0_20 = arith.constant 0 : index
    %28 = vector.load %arg12[%c0_19, %c0_20] : memref<16x8xf32, #tpu.memory_space<vmem>>, vector<16x8xf32>
    %29 = vector.broadcast %18 : vector<16x1xf32> to vector<16x8xf32>
    %30 = arith.mulf %29, %28 : vector<16x8xf32>
    %31 = arith.truncf %21 : vector<16x16xf32> to vector<16x16xbf16>
    %c0_21 = arith.constant 0 : index
    %c0_22 = arith.constant 0 : index
    %c0_23 = arith.constant 0 : index
    %c0_24 = arith.constant 0 : index
    %32 = vector.load %arg6[%c0_21, %c0_22, %c0_23, %c0_24] : memref<1x1x16x8xbf16, #tpu.memory_space<vmem>>, vector<1x1x16x8xbf16>
    %33 = vector.shape_cast %32 : vector<1x1x16x8xbf16> to vector<16x8xbf16>
    %cst_25 = arith.constant dense<0.000000e+00> : vector<16x8xf32>
    %34 = tpu.matmul %31, %33, %cst_25 {dimension_numbers = #tpu.dot_dimension_numbers<[1], [0], [0], [1], [0, 0, 1, 1], [], []>} : vector<16x16xbf16>, vector<16x8xbf16>, vector<16x8xf32> -> vector<16x8xf32>
    %35 = arith.addf %30, %34 : vector<16x8xf32>
    %c0_26 = arith.constant 0 : index
    %c0_27 = arith.constant 0 : index
    %36 = vector.load %arg12[%c0_26, %c0_27] : memref<16x8xf32, #tpu.memory_space<vmem>>, vector<16x8xf32>
    tpu.vector_store %arg12[%c0_26, %c0_27], %35 {strides = array<i32>} : memref<16x8xf32, #tpu.memory_space<vmem>>, vector<16x8xf32>,
    %c0_28 = arith.constant 0 : index
    %c0_29 = arith.constant 0 : index
    %37 = vector.load %arg10[%c0_28, %c0_29] : memref<16x1xf32, #tpu.memory_space<vmem>>, vector<16x1xf32>
    tpu.vector_store %arg10[%c0_28, %c0_29], %16 {strides = array<i32>} : memref<16x1xf32, #tpu.memory_space<vmem>>, vector<16x1xf32>,
    %c0_i32_30 = arith.constant 0 : i32
    %38 = arith.cmpi eq, %arg3, %c0_i32_30 : i32
    %39 = arith.extui %38 : i1 to i32
    %c0_i32_31 = arith.constant 0 : i32
    %40 = arith.cmpi ne, %39, %c0_i32_31 : i32
    scf.if %40 {
      %c0_34 = arith.constant 0 : index
      %c0_35 = arith.constant 0 : index
      %46 = vector.load %arg11[%c0_34, %c0_35] : memref<16x1xf32, #tpu.memory_space<vmem>>, vector<16x1xf32>
      %47 = tpu.reciprocal %46 {approx = true} : vector<16x1xf32> -> vector<16x1xf32>
      %c0_36 = arith.constant 0 : index
      %c0_37 = arith.constant 0 : index
      %48 = vector.load %arg12[%c0_36, %c0_37] : memref<16x8xf32, #tpu.memory_space<vmem>>, vector<16x8xf32>
      %49 = vector.broadcast %47 : vector<16x1xf32> to vector<16x8xf32>
      %50 = arith.mulf %48, %49 : vector<16x8xf32>
      %51 = arith.truncf %50 : vector<16x8xf32> to vector<16x8xbf16>
      %c0_38 = arith.constant 0 : index
      %c0_39 = arith.constant 0 : index
      %52 = vector.load %arg13[%c0_38, %c0_39] : memref<16x32xf32, #tpu.memory_space<vmem>>, vector<16x32xf32>
      %c0_40 = arith.constant 0 : index
      %c0_41 = arith.constant 0 : index
      %c0_42 = arith.constant 0 : index
      %53 = vector.load %arg7[%c0_40, %c0_41, %c0_42] : memref<1x8x32xbf16, #tpu.memory_space<vmem>>, vector<1x8x32xbf16>
      %54 = vector.shape_cast %53 : vector<1x8x32xbf16> to vector<8x32xbf16>
      %cst_43 = arith.constant dense<0.000000e+00> : vector<16x32xf32>
      %55 = tpu.matmul %51, %54, %cst_43 {dimension_numbers = #tpu.dot_dimension_numbers<[1], [0], [0], [1], [0, 0, 1, 1], [], []>} : vector<16x8xbf16>, vector<8x32xbf16>, vector<16x32xf32> -> vector<16x32xf32>
      %56 = arith.addf %52, %55 : vector<16x32xf32>
      %c0_44 = arith.constant 0 : index
      %c0_45 = arith.constant 0 : index
      %57 = vector.load %arg13[%c0_44, %c0_45] : memref<16x32xf32, #tpu.memory_space<vmem>>, vector<16x32xf32>
      tpu.vector_store %arg13[%c0_44, %c0_45], %56 {strides = array<i32>} : memref<16x32xf32, #tpu.memory_space<vmem>>, vector<16x32xf32>,
    } else {
    }
    %c3_i32 = arith.constant 3 : i32
    %41 = arith.cmpi eq, %arg2, %c3_i32 : i32
    %c0_i32_32 = arith.constant 0 : i32
    %42 = arith.cmpi eq, %arg3, %c0_i32_32 : i32
    %43 = arith.andi %41, %42 : i1
    %44 = arith.extui %43 : i1 to i32
    %c0_i32_33 = arith.constant 0 : i32
    %45 = arith.cmpi ne, %44, %c0_i32_33 : i32
    scf.if %45 {
      %c0_34 = arith.constant 0 : index
      %c0_35 = arith.constant 0 : index
      %46 = vector.load %arg13[%c0_34, %c0_35] : memref<16x32xf32, #tpu.memory_space<vmem>>, vector<16x32xf32>
      %c0_36 = arith.constant 0 : index
      %c0_37 = arith.constant 0 : index
      %47 = vector.load %arg8[%c0_36, %c0_37] : memref<1x32xf32, #tpu.memory_space<vmem>>, vector<1x32xf32>
      %48 = vector.broadcast %47 : vector<1x32xf32> to vector<16x32xf32>
      %49 = arith.addf %46, %48 : vector<16x32xf32>
      %c0_38 = arith.constant 0 : index
      %c0_39 = arith.constant 0 : index
      %c0_40 = arith.constant 0 : index
      %50 = vector.load %arg9[%c0_38, %c0_39, %c0_40] : memref<1x16x32xf32, #tpu.memory_space<vmem>>, vector<1x16x32xf32>
      %51 = vector.shape_cast %50 : vector<1x16x32xf32> to vector<16x32xf32>
      %52 = vector.shape_cast %49 : vector<16x32xf32> to vector<1x16x32xf32>
      tpu.vector_store %arg9[%c0_38, %c0_39, %c0_40], %52 {strides = array<i32>} : memref<1x16x32xf32, #tpu.memory_space<vmem>>, vector<1x16x32xf32>,
    } else {
    }
    return
  }
  func.func @transform_0(%arg0: i32, %arg1: i32, %arg2: i32, %arg3: i32) -> (i32, i32, i32, i32) {
    %c0_i32 = arith.constant 0 : i32
    %c0_i32_0 = arith.constant 0 : i32
    return %arg0, %arg2, %arg1, %c0_i32 : i32, i32, i32, i32
  }
  func.func @transform_1(%arg0: i32, %arg1: i32, %arg2: i32, %arg3: i32) -> (i32, i32, i32, i32) {
    %c4_i32 = arith.constant 4 : i32
    %0 = arith.addi %c4_i32, %arg2 : i32
    %c0_i32 = arith.constant 0 : i32
    %c0_i32_0 = arith.constant 0 : i32
    return %arg0, %0, %arg3, %c0_i32 : i32, i32, i32, i32
  }
  func.func @transform_2(%arg0: i32, %arg1: i32, %arg2: i32, %arg3: i32) -> (i32, i32, i32, i32) {
    %c8_i32 = arith.constant 8 : i32
    %0 = arith.addi %c8_i32, %arg2 : i32
    %c0_i32 = arith.constant 0 : i32
    %c0_i32_0 = arith.constant 0 : i32
    return %arg0, %0, %arg3, %c0_i32 : i32, i32, i32, i32
  }
  func.func @transform_3(%arg0: i32, %arg1: i32, %arg2: i32, %arg3: i32) -> (i32, i32, i32) {
    %c0_i32 = arith.constant 0 : i32
    %c0_i32_0 = arith.constant 0 : i32
    %c0_i32_1 = arith.constant 0 : i32
    return %arg2, %c0_i32, %c0_i32_0 : i32, i32, i32
  }
  func.func @transform_4(%arg0: i32, %arg1: i32, %arg2: i32, %arg3: i32) -> (i32, i32) {
    %c0_i32 = arith.constant 0 : i32
    %c0_i32_0 = arith.constant 0 : i32
    %c0_i32_1 = arith.constant 0 : i32
    return %c0_i32, %c0_i32_0 : i32, i32
  }
  func.func @transform_5(%arg0: i32, %arg1: i32, %arg2: i32, %arg3: i32) -> (i32, i32, i32) {
    %c0_i32 = arith.constant 0 : i32
    %c0_i32_0 = arith.constant 0 : i32
    return %arg0, %arg1, %c0_i32 : i32, i32, i32
  }
}

</mosaic_0001>

<bundles_post_ra>
// kernel: multi_head_attention.2
= control target key start
LH: loop header
LB: loop body
LE: loop exit
PB: predicated region body
PF: predicated region fallthrough
CT: control target
= control target key end

     0   :  { %8 = vsyncpa [#allocation3], 0  ;;  %s1037_s0 = inlined_call_operand.hbm [shape: f32[2,16,32], index: 0, kind: input, shape index: {}]   ;;  %s1038_s1 = inlined_call_operand.hbm [shape: bf16[32,96], index: 1, kind: input, shape index: {}]   ;;  %s1039_s2 = inlined_call_operand.hbm [shape: f32[1,96], index: 2, kind: input, shape index: {}]   ;;  %s1040_s3 = inlined_call_operand.hbm [shape: bf16[2,16,96], index: 3, kind: output, shape index: {}]  }
   0x1   :  { %10 = vsyncpa [#allocation3 + $0x1], 0 }
   0x2   :  { %11 = vsyncpa [#allocation6], 0 }
   0x3   :  { %12 = vsyncpa [#allocation4], 0 }
   0x4   :  { %14 = vsyncpa [#allocation4 + $0x1], 0  ;;  %s780_s12 = smov 0   ;;  %s782_s13 = smov 0  }
   0x5   :  { %s784_s14 = smov 0   ;;  %s786_s15 = smov 0  }
   0x6   :  { %s788_s16 = smov 0   ;;  %s790_s17 = smov 0  }
   0x7 LB: > { %s441_s18 = sadd.s32 4294967295, %s746_s17   ;;  %s442_s19 = sadd.s32 4294967294, %s746_s17   ;;  %s746_s17 = sphi %s790_s17, %s20_s17   ;;  %s742_s16 = sphi %s788_s16, %s1062_s16   ;;  %s738_s15 = sphi %s786_s15, %s1061_s15   ;;  %s734_s14 = sphi %s784_s14, %s1060_s14   ;;  %s730_s13 = sphi %s782_s13, %s1059_s13   ;;  %s726_s12 = sphi %s780_s12, %s1058_s12  }
   0x8   : > { %p54_p0 = scmp.ne.s32.totalorder %s730_s13, %s726_s12  ;;  %p814_p1 = scmp.eq.s32.totalorder %s441_s18, 0 }
   0x9   : > { %p818_p2 = scmp.eq.s32.totalorder %s441_s18, 1  ;;  %p128_p3 = scmp.eq.s32.totalorder %s442_s19, 1 }
   0xa   : > { %s1045_s20 = scalar_select %p814_p1, 1, 0 }
   0xb   : > { %p824_p4 = por %p814_p1, %p54_p0  ;;  %p443_p5 = scmp.ge.s32.totalorder %s746_s17, 1 }
   0xc   : > { %p829_p6 = por %p128_p3, %p54_p0  ;;  %p135_p7 = scmp.lt.s32.totalorder %s746_s17, 3 }
   0xd   : > { %s1047_s22 = scalar_select %p824_p4, 1, 0 }
   0xe   : > { %s1048_s23 = scalar_select %p829_p6, 1, 0 }
   0xf   : > { %p834_p8 = pnand %p443_p5, %p135_p7  ;;  %s748_s25 = smov [#allocation5]  }
  0x10   : > { %s147_s26 = sshll.u32 %s748_s25, 4  ;;  %s749_s28 = smov [#allocation7]   ;;  %s838_s26 = int_to_ptr.vmem [resolvable:$true] %s147_s26 }
  0x11   : > { %p493_p9 = pneg %p834_p8  ;;  %s161_s29 = sshll.u32 %s749_s28, 4  ;;  %s849_s29 = int_to_ptr.vmem [resolvable:$true] %s161_s29 }
  0x12   : > { %s574_s5 = scalar_lea.hbm %s1038_s1, 256 }
  0x13   : > { %p845_p11 = pnand %p493_p9, %p814_p1  ;;  %p575_p12 = scmp.ne.s32.totalorder %s1038_s1, %s574_s5 }
  0x14   : > { %p581_p5 = scmp.lt.u32.totalorder %s574_s5, %s1038_s1 }
  0x15   : > { %p576_p13 = pneg %p845_p11 }
  0x17   : > { %p577_p0 = pnand %p576_p13, %p575_p12 }
  0x19   : > { %p578_p3 = pneg %p577_p0 }
  0x1b   : > { %p583_p7 = pnand %p581_p5, %p578_p3 }
  0x1d   : > { %586 = shalt.err (!%p583_p7)
}
  0x1e   : > { %s587_s10 = scalar_lea.vmem %s838_s26, 256  ;;  %p595_p1 = scmp.lt.s32.totalorder %s838_s26, %s838_s26 }
  0x1f   : > { %p588_p9 = scmp.ne.s32.totalorder %s838_s26, %s587_s10  ;;  %p596_p12 = scmp.lt.s32.totalorder %s587_s10, %s587_s10 }
  0x21   : > { %p590_p10 = pnand %p588_p9, %p576_p13  ;;  %p597_p0 = por %p596_p12, %p595_p1 }
  0x23   : > { %p591_p6 = pneg %p590_p10 }
  0x25   : > { %p598_p4 = pnand %p597_p0, %p591_p6 }
  0x27   : > { %601 = shalt.err (!%p598_p4)
}
  0x28   : > { %s750_s11 = smov 64   ;;  %s751_s18 = smov 4  }
  0x29   : > { %496 = dma.hbm_to_vmem [thread:$0]  (!%p845_p11), %s1038_s1, 256, %s838_s26, [#allocation6], %s750_s11, %s750_s11, %s751_s18  }
  0x2a   : > { %s602_s4 = scalar_lea.hbm %s1039_s2, 16 }
  0x2b   : > { %p603_p1 = scmp.ne.s32.totalorder %s1039_s2, %s602_s4  ;;  %p609_p10 = scmp.lt.u32.totalorder %s602_s4, %s1039_s2 }
  0x2d   : > { %p605_p4 = pnand %p603_p1, %p576_p13 }
  0x2f   : > { %p606_p6 = pneg %p605_p4 }
  0x31   : > { %p611_p3 = pnand %p609_p10, %p606_p6 }
  0x33   : > { %614 = shalt.err (!%p611_p3)
}
  0x34   : > { %s615_s26 = scalar_lea.vmem %s849_s29, 16  ;;  %s622_s9 = scalar_lea.vmem %s849_s29, 32 }
  0x35   : > { %p616_p5 = scmp.ne.s32.totalorder %s849_s29, %s615_s26  ;;  %p623_p12 = scmp.lt.s32.totalorder %s849_s29, %s849_s29 }
  0x36   : > { %p624_p0 = scmp.lt.s32.totalorder %s622_s9, %s615_s26 }
  0x37   : > { %p618_p7 = pnand %p616_p5, %p576_p13 }
  0x38   : > { %p625_p1 = por %p624_p0, %p623_p12 }
  0x39   : > { %p619_p9 = pneg %p618_p7 }
  0x3b   : > { %p626_p4 = pnand %p625_p1, %p619_p9 }
  0x3d   : > { %629 = shalt.err (!%p626_p4)
}
  0x3e   : > { %499 = dma.hbm_to_vmem [thread:$0]  (!%p845_p11), %s1039_s2, 16, %s849_s29, [#allocation6]  }
  0x3f   : > { %s32_s18 = sadd.s32 1, %s742_s16  ;;  %s41_s19 = sadd.s32 1, %s734_s14 }
  0x40   : > { %p34_p13 = scmp.ge.s32.totalorder %s32_s18, 2  ;;  %p48_p6 = scmp.ne.s32.totalorder %s734_s14, %s730_s13 }
  0x41   : > { %p49_p10 = scmp.eq.s32.totalorder %s746_s17, 0  ;;  %p510_p3 = scmp.lt.s32.totalorder %s746_s17, 2 }
  0x42   : > { %s1064_s18 = smov (%p34_p13, %s32_s18), 0  ;;  %p914_p7 = por %p818_p2, %p48_p6 }
  0x43   : > { %p50_p5 = por %p49_p10, %p48_p6  ;;  %s36_s25 = ssub.s32 %s742_s16, %s1064_s18 }
  0x44   : > { %s1051_s27 = scalar_select %p914_p7, 1, 0 }
  0x45   : > { %s172_s28 = sand.u32 1, %s734_s14   ;;  %p39_p9 = scmp.eq.s32.totalorder %s36_s25, 0 }
  0x46   : > { %s447_s29 = sshll.u32 %s172_s28, 4  ;;  %s466_s30 = sshll.u32 %s742_s16, 8 }
  0x47   : > { %s923_s4 = scalar_select %p39_p9, %s734_s14, %s41_s19  }
  0x48   : > { %s928_s7 = scalar_lea.hbm %s1037_s0, %s466_s30  ;;  %s176_s21 = scalar_lea.vmem [#allocation2], %s447_s29 }
  0x49   : > { %s185_s8 = sshll.u32 %s176_s21, 4  ;;  %p932_p2 = pnand %p510_p3, %p50_p5  ;;  %s936_s8 = int_to_ptr.vmem [resolvable:$true] %s185_s8 }
  0x4a   : > { %s938_s9 = scalar_lea.sflag [#allocation3], %s172_s28  ;;  %s630_s10 = scalar_lea.hbm %s928_s7, 256 }
  0x4b   : > { %p631_p11 = scmp.ne.s32.totalorder %s928_s7, %s630_s10  ;;  %p632_p12 = pneg %p932_p2 }
  0x4c   : > { %s635_s25 = scalar_lea.hbm %s1037_s0, 512  ;;  %p636_p4 = scmp.lt.u32.totalorder %s928_s7, %s1037_s0 }
  0x4d   : > { %p633_p0 = pnand %p632_p12, %p631_p11  ;;  %p637_p13 = scmp.lt.u32.totalorder %s635_s25, %s630_s10 }
  0x4e   : > { %p639_p10 = scmp.lt.u32.totalorder %s630_s10, %s928_s7 }
  0x4f   : > { %p634_p1 = pneg %p633_p0  ;;  %p638_p6 = por %p637_p13, %p636_p4 }
  0x51   : > { %p640_p3 = por %p639_p10, %p638_p6 }
  0x53   : > { %p641_p5 = pnand %p640_p3, %p634_p1 }
  0x55   : > { %644 = shalt.err (!%p641_p5)
}
  0x56   : > { %s645_s28 = scalar_lea.vmem %s936_s8, 256  ;;  %s752_s5 = smov [#allocation2]  }
  0x57   : > { %p646_p9 = scmp.ne.s32.totalorder %s936_s8, %s645_s28  ;;  %s650_s6 = sshll.u32 %s752_s5, 4  ;;  %s651_s6 = int_to_ptr.vmem [resolvable:$false] %s650_s6 }
  0x58   : > { %s652_s21 = scalar_lea.vmem %s651_s6, 512  ;;  %p653_p7 = scmp.lt.s32.totalorder %s936_s8, %s651_s6 }
  0x59   : > { %p648_p11 = pnand %p646_p9, %p632_p12  ;;  %p654_p4 = scmp.lt.s32.totalorder %s652_s21, %s645_s28 }
  0x5b   : > { %p649_p0 = pneg %p648_p11  ;;  %p655_p13 = por %p654_p4, %p653_p7 }
  0x5d   : > { %p656_p6 = pnand %p655_p13, %p649_p0 }
  0x5f   : > { %659 = shalt.err (!%p656_p6)
}
  0x60   : > { %s753_s10 = smov 128   ;;  %s754_s11 = smov 8  }
  0x61   : > { %503 = dma.hbm_to_vmem [thread:$0]  (!%p932_p2), %s928_s7, 256, %s936_s8, %s938_s9, %s753_s10, %s753_s10, %s754_s11  }
  0x62   : > { %197 = sbr.rel (%p834_p8) target bundleno = 351 (0x15f), region = 32  ;;  %s969_s19 = sand.u32 (!%p834_p8), 1, %s730_s13  }
  0x63   : > { %s451_s25 = sshll.u32 (!%p834_p8), %s969_s19, 4  ;;  %s200_s29 = scalar_lea.sflag (!%p834_p8), [#allocation3], %s969_s19 }
  0x64   : > { %s203_s30 = scalar_lea.vmem (!%p834_p8), [#allocation2], %s451_s25  ;;  %p1053_p7 = scmp.ne.s32.totalorder (!%p834_p8), %s1047_s22, 0 }
  0x69   : > { %713 = dma.done.wait (%p1053_p7), %s200_s29, 256  }
  0x6a   : > { %715 = vsyncadd (%p1053_p7), %s200_s29, 4294967040  ;;  %p1054_p12 = scmp.ne.s32.totalorder %s1045_s20, 0 }
  0x6c   : > { %717 = dma.done.wait (%p1054_p12), [#allocation6], 272  }
  0x6d   : > { %719 = vsyncadd (%p1054_p12), [#allocation6], 4294967024  ;;  %v755_v0 = vmov 0.0   ;;  %vm756_vm0 = vmmov 0   ;;  %v572_v1 = vld [vmem:[#allocation5] sm:$0xff]   ;;  %v573_v2 = vld [vmem:[#allocation5 + $0x8] sm:$0xff]  }
  0x6e   : > { %473 = vmatprep.subr.bf16.mxu0 %v755_v0  ;;  %477 = vmatprep.mubr.msk.bf16.mxu0 %vm756_vm0, %v755_v0  ;;  %v237_v3 = vld [vmem:[%s203_s30] sm:$0xff]  ;;  %v238_v4 = vld [vmem:[%s203_s30 + $0x8] sm:$0xff]  ;;  %vm263_vm1 = vcmask 261120   ;;  %s454_s22 = sshll.u32 %s969_s19, 3  ;;  %s469_s7 = sshll.u32 %s738_s15, 7  ;;  %vm316_vm2 = vcmask 781312  }
  0x6f   : > { %474 = vmatpush3.bf16.msra.mxu0 %v572_v1  ;;  %v239_v5 = vpack.c.bf16 %v238_v4, %v237_v3  ;;  %v455_v6 = vld [vmem:[#allocation7] ss:$0 sm:$0xff]  ;;  %s233_s20 = scalar_lea.vmem [#allocation8], %s454_s22  ;;  %s986_s9 = scalar_lea.hbm %s1040_s3, %s469_s7 }
  0x70   : > { %475 = vmatprep.subr.bf16.mxu0 %v755_v0  ;;  %s335_s24 = sshll.u32 %s233_s20, 4  ;;  %s320_s28 = scalar_lea.sflag [#allocation4], %s969_s19  ;;  %s988_s24 = int_to_ptr.vmem [resolvable:$true] %s335_s24 }
  0x71   : > { %s660_s15 = scalar_lea.vmem %s988_s24, 128  ;;  %p1055_p2 = scmp.ne.s32.totalorder %s1051_s27, 0 }
  0x72   : > { %p661_p8 = scmp.ne.s32.totalorder %s988_s24, %s660_s15  ;;  %s757_s5 = smov [#allocation8]  }
  0x73   : > { %476 = vmatpush3.bf16.msra.mxu0 %v573_v2  ;;  %s664_s6 = sshll.u32 %s757_s5, 4  ;;  %s665_s6 = int_to_ptr.vmem [resolvable:$false] %s664_s6 }
  0x74   : > { %p662_p1 = pnand %p661_p8, %p1055_p2  ;;  %s666_s21 = scalar_lea.vmem %s665_s6, 256 }
  0x75   : > { %p667_p3 = scmp.lt.s32.totalorder %s988_s24, %s665_s6  ;;  %p668_p5 = scmp.lt.s32.totalorder %s666_s21, %s660_s15 }
  0x76   : > { %478 = vmatmul.mubr.msk.bf16.vlgmr.msra.gmra.mrb[0].mxu0 %vm263_vm1, %v239_v5  ;;  %p663_p10 = pneg %p662_p1 }
  0x77   : > { %p669_p9 = por %p668_p5, %p667_p3 }
  0x79   : > { %p670_p11 = pnand %p669_p9, %p663_p10 }
 0x149   : > { %v301_v7 = vpop.f32.mrb[0].mxu0 }
 0x14a   : > { %v302_v8 = vadd.f32 %v455_v6, %v301_v7  ;;  %v479_v9 = vpop.f32.mrb[1].mxu0 }
 0x14b   : > { %v304_v10 = vpop.f32.mrb[2].mxu0 }
 0x14c   : > { %v467_v11 = vpack.c.bf16 %v302_v8, %v302_v8  ;;  %v305_v12 = vadd.f32 %v455_v6, %v304_v10  ;;  %v480_v13 = vpop.f32.mrb[3].mxu0 }
 0x14e   : > { %317 = vst.msk [vmem:[%s233_s20] sm:$0xf] %vm316_vm2, %v467_v11  ;;  %v468_v14 = vpack.c.bf16 %v305_v12, %v305_v12 }
 0x150   : > { %318 = vst.msk [vmem:[%s233_s20 + $0x4] sm:$0xf] %vm316_vm2, %v468_v14 }
 0x151   : > { %673 = shalt.err (!%p670_p11)
}
 0x152   : > { %s674_s10 = scalar_lea.hbm %s986_s9, 128  ;;  %s678_s29 = scalar_lea.hbm %s1040_s3, 256 }
 0x153   : > { %p675_p0 = scmp.ne.s32.totalorder %s986_s9, %s674_s10  ;;  %p679_p6 = scmp.lt.u32.totalorder %s986_s9, %s1040_s3 }
 0x154   : > { %p680_p7 = scmp.lt.u32.totalorder %s678_s29, %s674_s10  ;;  %p682_p8 = scmp.lt.u32.totalorder %s674_s10, %s986_s9 }
 0x155   : > { %p676_p4 = pnand %p675_p0, %p1055_p2 }
 0x156   : > { %p681_p12 = por %p680_p7, %p679_p6 }
 0x157   : > { %p677_p13 = pneg %p676_p4 }
 0x158   : > { %p683_p1 = por %p682_p8, %p681_p12 }
 0x15a   : > { %p684_p10 = pnand %p683_p1, %p677_p13 }
 0x15c   : > { %687 = shalt.err (!%p684_p10)
}
 0x15d   : > { %s758_s20 = smov 64   ;;  %s759_s7 = smov 4  }
 0x15e   : > { %491 = dma.vmem_to_hbm [thread:$0]  (%p1055_p2), %s988_s24, 128, %s986_s9, %s320_s28, %s758_s20, %s758_s20, %s759_s7  }
 0x15f PF: > { %s350_s8 = sand.u32 1, %s726_s12   ;;  %p1056_p3 = scmp.ne.s32.totalorder %s1048_s23, 0 }
 0x160   : > { %p1057_p5 = scmp.ge.s32.totalorder %s746_s17, 2  ;;  %s351_s26 = scalar_lea.sflag [#allocation4], %s350_s8 }
 0x162   : > { %p505_p9 = pnand %p1057_p5, %p1056_p3 }
 0x164   : > { %721 = dma.done.wait (!%p505_p9), %s351_s26, 128  }
 0x165   : > { %723 = vsyncadd (!%p505_p9), %s351_s26, 4294967168  ;;  %s20_s17 = sadd.s32 1, %s746_s17   ;;  %s1058_s12 = smov %s730_s13 }
 0x166   : > { %p17_p11 = scmp.ge.s32.totalorder %s20_s17, 4   ;;  %s1059_s13 = smov %s734_s14 }
 0x167   : > { %s1060_s14 = smov %s923_s4  ;;  %s1061_s15 = smov %s742_s16 }
 0x168   : > { %s1062_s16 = smov %s1064_s18  ;;  %19 = sbr.rel (!%p17_p11) target bundleno = 7 (0x7), region = 85 }
 0x16f   :  { %356 = vsyncpa [#allocation3], 1 }
 0x170   :  { %358 = vsyncpa [#allocation3 + $0x1], 1 }
 0x171   :  { %359 = vsyncpa [#allocation6], 1 }
 0x172   :  { %360 = vsyncpa [#allocation4], 1 }
 0x173   :  { %362 = vsyncpa [#allocation4 + $0x1], 1 }

// kernel: multi_head_attention.3
= control target key start
LH: loop header
LB: loop body
LE: loop exit
PB: predicated region body
PF: predicated region fallthrough
CT: control target
= control target key end

     0   :  { %s2271_s0 = inlined_call_operand.hbm [shape: bf16[2,12,16,8], index: 0, kind: input, shape index: {}, may-alias: {0,1,2}]   ;;  %s2272_s1 = inlined_call_operand.hbm [shape: bf16[2,12,16,8], index: 1, kind: input, shape index: {}, may-alias: {0,1,2}]   ;;  %s2273_s2 = inlined_call_operand.hbm [shape: bf16[2,12,16,8], index: 2, kind: input, shape index: {}, may-alias: {0,1,2}]   ;;  %s2274_s3 = inlined_call_operand.hbm [shape: bf16[4,8,32], index: 3, kind: input, shape index: {}]   ;;  %s2275_s4 = inlined_call_operand.hbm [shape: f32[1,32], index: 4, kind: input, shape index: {}]   ;;  %s2276_s5 = inlined_call_operand.hbm [shape: f32[2,16,32], index: 5, kind: output, shape index: {}]  }
   0x1   :  { %2309 = sst [smem:[#allocation41_spill]] %s2271_s0 }
   0x2   :  { %2310 = sst [smem:[#allocation42_spill]] %s2272_s1 }
   0x3   :  { %2311 = sst [smem:[#allocation43_spill]] %s2273_s2 }
   0x4   :  { %2312 = sst [smem:[#allocation44_spill]] %s2274_s3 }
   0x5   :  { %2313 = sst [smem:[#allocation45_spill]] %s2275_s4 }
   0x6   :  { %2314 = sst [smem:[#allocation46_spill]] %s2276_s5 }
   0x7   :  { %10 = vsyncpa [#allocation7], 0 }
   0x8   :  { %12 = vsyncpa [#allocation7 + $0x1], 0 }
   0x9   :  { %13 = vsyncpa [#allocation10], 0 }
   0xa   :  { %15 = vsyncpa [#allocation10 + $0x1], 0 }
   0xb   :  { %16 = vsyncpa [#allocation13], 0 }
   0xc   :  { %18 = vsyncpa [#allocation13 + $0x1], 0 }
   0xd   :  { %19 = vsyncpa [#allocation8], 0 }
   0xe   :  { %21 = vsyncpa [#allocation8 + $0x1], 0  ;;  %s1633_s18 = smov 0   ;;  %s1635_s19 = smov 0  }
   0xf   :  { %s1637_s20 = smov 0   ;;  %s1639_s21 = smov 0  }
  0x10   :  { %s1641_s22 = smov 0   ;;  %s1643_s23 = smov 0  }
  0x11   :  { %s1645_s24 = smov 0   ;;  %s1647_s25 = smov 0  }
  0x12   :  { %s1649_s26 = smov 0   ;;  %s1651_s27 = smov 0  }
  0x13   :  { %s1653_s28 = smov 0   ;;  %s1655_s29 = smov 0  }
  0x14   :  { %s1657_s30 = smov 0   ;;  %s1659_s6 = smov 0  }
  0x15   :  { %s1661_s7 = smov 0   ;;  %s1663_s8 = smov 0  }
  0x16   :  { %s1665_s9 = smov 0   ;;  %s1667_s10 = smov 0  }
  0x17   :  { %s1669_s11 = smov 0   ;;  %s1671_s12 = smov 0  }
  0x18 LB: > { %2315 = sst [smem:[#allocation22_spill]] %s1510_s18  ;;  %s1734_s13 = sadd.s32 4294967295, %s1586_s12   ;;  %s1586_s12 = sphi %s1671_s12, %s27_s12   ;;  %s1582_s11 = sphi %s1669_s11, %s2419_s11   ;;  %s1578_s10 = sphi %s1667_s10, %s2418_s10   ;;  %s1574_s9 = sphi %s1665_s9, %s2402_s9   ;;  %s1570_s8 = sphi %s1663_s8, %s2417_s8   ;;  %s1566_s7 = sphi %s1661_s7, %s2416_s7   ;;  %s1562_s6 = sphi %s1659_s6, %s2415_s6   ;;  %s1558_s30 = sphi %s1657_s30, %s2414_s30   ;;  %s1554_s29 = sphi %s1655_s29, %s2413_s29   ;;  %s1550_s28 = sphi %s1653_s28, %s2412_s28   ;;  %s1546_s27 = sphi %s1651_s27, %s2398_s27   ;;  %s1542_s26 = sphi %s1649_s26, %s2411_s26   ;;  %s1538_s25 = sphi %s1647_s25, %s2410_s25   ;;  %s1534_s24 = sphi %s1645_s24, %s2409_s24   ;;  %s1530_s23 = sphi %s1643_s23, %s2408_s23   ;;  %s1526_s22 = sphi %s1641_s22, %s2397_s22   ;;  %s1522_s21 = sphi %s1639_s21, %s2396_s21   ;;  %s1518_s20 = sphi %s1637_s20, %s2405_s20   ;;  %s1514_s19 = sphi %s1635_s19, %s2403_s19   ;;  %s1510_s18 = sphi %s1633_s18, %s2395_s18  }
  0x19   : > { %2316 = sst [smem:[#allocation23_spill]] %s1514_s19  ;;  %s936_s14 = sadd.s32 4294967294, %s1586_s12  }
  0x1a   : > { %2317 = sst [smem:[#allocation24_spill]] %s1522_s21  ;;  %p2286_p0 = scmp.eq.s32.totalorder %s1734_s13, 0 }
  0x1b   : > { %2318 = sst [smem:[#allocation25_spill]] %s1526_s22  ;;  %p213_p1 = scmp.ne.s32.totalorder %s1518_s20, %s1514_s19 }
  0x1c   : > { %2319 = sst [smem:[#allocation26_spill]] %s1530_s23  ;;  %p214_p2 = scmp.eq.s32.totalorder %s1734_s13, 7 }
  0x1d   : > { %2320 = sst [smem:[#allocation27_spill]] %s1534_s24  ;;  %p219_p3 = scmp.ne.s32.totalorder %s1514_s19, %s1510_s18 }
  0x1e   : > { %2321 = sst [smem:[#allocation28_spill]] %s1550_s28  ;;  %p220_p4 = scmp.eq.s32.totalorder %s936_s14, 7 }
  0x1f   : > { %2322 = sst [smem:[#allocation29_spill]] %s1566_s7  ;;  %p1744_p5 = por %p214_p2, %p213_p1 }
  0x20   : > { %2323 = sst [smem:[#allocation30_spill]] %s1570_s8  ;;  %p937_p6 = scmp.ge.s32.totalorder %s1586_s12, 1 }
  0x21   : > { %2324 = sst [smem:[#allocation31_spill]] %s1574_s9  ;;  %p1749_p7 = por %p220_p4, %p219_p3 }
  0x22   : > { %2325 = sst [smem:[#allocation32_spill]] %s1582_s11  ;;  %p227_p8 = scmp.lt.s32.totalorder %s1586_s12, 9 }
  0x23   : > { %s2326_s16 = scalar_select %p1744_p5, 1, 0 }
  0x24   : > { %s2328_s17 = scalar_select %p1749_p7, 1, 0 }
  0x25   : > { %2327 = sst [smem:[#allocation33_spill]] %s2326_s16  ;;  %p1754_p9 = pnand %p937_p6, %p227_p8 }
  0x26   : > { %2329 = sst [smem:[#allocation34_spill]] %s2328_s17  ;;  %s1588_s15 = smov [#allocation14]  }
  0x27   : > { %s2330_s5 = scalar_select %p1754_p9, 1, 0 }
  0x28   : > { %s240_s9 = sshll.u32 %s1588_s15, 4  ;;  %p1014_p10 = pneg %p1754_p9  ;;  %s241_s9 = int_to_ptr.vmem [resolvable:$true] %s240_s9 }
  0x29   : > { %2331 = sst [smem:[#allocation35_spill]] %s2330_s5  ;;  %s2333_s4 = sld [smem:[#allocation45_spill]] }
  0x2a   : > { %p1762_p11 = pnand %p1014_p10, %p2286_p0 }
  0x2c   : > { %p1228_p13 = pneg %p1762_p11 }
  0x2f   : > { %s1226_s17 = scalar_lea.hbm %s2333_s4, 16 }
  0x30   : > { %p1227_p12 = scmp.ne.s32.totalorder %s2333_s4, %s1226_s17  ;;  %p1233_p3 = scmp.lt.u32.totalorder %s1226_s17, %s2333_s4 }
  0x32   : > { %p1229_p1 = pnand %p1228_p13, %p1227_p12 }
  0x34   : > { %p1230_p2 = pneg %p1229_p1 }
  0x36   : > { %p1235_p4 = pnand %p1233_p3, %p1230_p2 }
  0x38   : > { %1238 = shalt.err (!%p1235_p4)
}
  0x39   : > { %s1239_s3 = scalar_lea.vmem %s241_s9, 16  ;;  %s1246_s18 = scalar_lea.vmem %s241_s9, 32 }
  0x3a   : > { %p1240_p6 = scmp.ne.s32.totalorder %s241_s9, %s1239_s3  ;;  %p1247_p0 = scmp.lt.s32.totalorder %s241_s9, %s241_s9 }
  0x3b   : > { %p1248_p7 = scmp.lt.s32.totalorder %s1246_s18, %s1239_s3 }
  0x3c   : > { %p1242_p8 = pnand %p1240_p6, %p1228_p13 }
  0x3d   : > { %p1249_p5 = por %p1248_p7, %p1247_p0 }
  0x3e   : > { %p1243_p10 = pneg %p1242_p8 }
  0x40   : > { %p1250_p9 = pnand %p1249_p5, %p1243_p10 }
  0x42   : > { %1253 = shalt.err (!%p1250_p9)
}
  0x43   : > { %1017 = dma.hbm_to_vmem [thread:$0]  (!%p1762_p11), %s2333_s4, 16, %s241_s9, [#allocation13]  }
  0x44   : > { %s45_s3 = sadd.s32 1, %s1578_s10  ;;  %s53_s5 = sadd.s32 1, %s1582_s11 }
  0x45   : > { %p47_p0 = scmp.ge.s32.totalorder %s45_s3, 4  ;;  %p2297_p5 = scmp.eq.s32.totalorder %s1586_s12, 0 }
  0x46   : > { %s87_s16 = sadd.s32 4, %s1578_s10  ;;  %s96_s14 = sadd.s32 1, %s1554_s29 }
  0x47   : > { %s2421_s3 = smov (%p47_p0, %s45_s3), 0  ;;  %s2423_s5 = smov (!%p47_p0, %s53_s5), %s1582_s11 }
  0x48   : > { %2334 = sst [smem:[#allocation36_spill]] %s2421_s3  ;;  %s88_s17 = sadd.s32 4, %s2421_s3 }
  0x49   : > { %p55_p7 = scmp.ge.s32.totalorder %s2423_s5, 2  ;;  %s90_s9 = ssub.s32 %s87_s16, %s88_s17 }
  0x4a   : > { %p103_p9 = scmp.ne.s32.totalorder %s1554_s29, %s1550_s28  ;;  %p109_p11 = scmp.ne.s32.totalorder %s1550_s28, %s1546_s27 }
  0x4b   : > { %s2425_s5 = smov (%p55_p7, %s2423_s5), 0  ;;  %p2337_p13 = scmp.eq.s32.totalorder %s1734_s13, 0 }
  0x4c   : > { %2335 = sst [smem:[#allocation37_spill]] %s2425_s5  ;;  %p1799_p12 = por %p103_p9, %p2297_p5 }
  0x4d   : > { %p1805_p1 = por %p109_p11, %p2337_p13  ;;  %s1811_s19 = ssub.s32 %s1582_s11, %s2425_s5 }
  0x4e   : > { %s119_s27 = sadd.s32 8, %s1578_s10  ;;  %s91_s8 = sor.u32 %s90_s9, %s1811_s19 }
  0x4f   : > { %s2338_s18 = scalar_select %p1805_p1, 1, 0 }
  0x50   : > { %s120_s16 = sadd.s32 8, %s2421_s3  ;;  %p94_p2 = scmp.eq.s32.totalorder %s91_s8, 0 }
  0x51   : > { %2339 = sst [smem:[#allocation38_spill]] %s2338_s18  ;;  %s1816_s17 = ssub.s32 %s119_s27, %s120_s16 }
  0x52   : > { %p201_p3 = scmp.eq.s32.totalorder %s1811_s19, 0  ;;  %s2341_s18 = sadd.s32 1, %s1518_s20 }
  0x53   : > { %s1822_s28 = scalar_select %p94_p2, %s1554_s29, %s96_s14  }
  0x54   : > { %s1827_s5 = scalar_select %p201_p3, %s1518_s20, %s2341_s18  }
  0x55   : > { %2340 = sst [smem:[#allocation39_spill]] %s1822_s28  ;;  %p2296_p4 = scmp.lt.s32.totalorder %s1586_s12, 8 }
  0x56   : > { %s941_s21 = sshll.u32 %s1578_s10, 1  ;;  %s999_s22 = smul.u32 24, %s1582_s11 }
  0x57   : > { %s2298_s23 = sand.u32 1, %s1586_s12   ;;  %s278_s27 = sand.u32 1, %s1554_s29  }
  0x58   : > { %s263_s9 = sadd.s32 %s999_s22, %s941_s21  ;;  %s943_s8 = sshll.u32 %s278_s27, 3 }
  0x59   : > { %s1833_s2 = sshll.u32 %s263_s9, 6  ;;  %s2342_s1 = sld [smem:[#allocation42_spill]] }
  0x5a   : > { %s280_s18 = scalar_lea.vmem [#allocation9], %s943_s8  ;;  %p1846_p6 = pnand %p2296_p4, %p1799_p12 }
  0x5b   : > { %s292_s28 = sshll.u32 %s280_s18, 4  ;;  %s1854_s4 = scalar_lea.sflag [#allocation10], %s2298_s23  ;;  %s1850_s28 = int_to_ptr.vmem [resolvable:$true] %s292_s28 }
  0x5c   : > { %p1256_p10 = pneg %p1846_p6 }
  0x5f   : > { %s802_s24 = scalar_lea.hbm %s2342_s1, %s1833_s2  ;;  %s1259_s27 = scalar_lea.hbm %s2342_s1, 3072 }
  0x60   : > { %s1840_s14 = scalar_lea.hbm %s802_s24, 512  ;;  %s1284_s22 = scalar_lea.hbm %s802_s24, 640 }
  0x61   : > { %p1255_p8 = scmp.ne.s32.totalorder %s1840_s14, %s1284_s22  ;;  %p1260_p9 = scmp.lt.u32.totalorder %s1840_s14, %s2342_s1 }
  0x62   : > { %p1261_p11 = scmp.lt.u32.totalorder %s1259_s27, %s1284_s22  ;;  %p1263_p13 = scmp.lt.u32.totalorder %s1284_s22, %s1840_s14 }
  0x63   : > { %p1257_p0 = pnand %p1256_p10, %p1255_p8 }
  0x64   : > { %p1262_p12 = por %p1261_p11, %p1260_p9 }
  0x65   : > { %p1258_p7 = pneg %p1257_p0 }
  0x66   : > { %p1264_p2 = por %p1263_p13, %p1262_p12 }
  0x68   : > { %p1265_p3 = pnand %p1264_p2, %p1258_p7 }
  0x6a   : > { %1268 = shalt.err (!%p1265_p3)
}
  0x6b   : > { %s1269_s24 = scalar_lea.vmem %s1850_s28, 128  ;;  %s1589_s18 = smov [#allocation9]  }
  0x6c   : > { %p1270_p8 = scmp.ne.s32.totalorder %s1850_s28, %s1269_s24  ;;  %s1274_s15 = sshll.u32 %s1589_s18, 4  ;;  %s1275_s15 = int_to_ptr.vmem [resolvable:$false] %s1274_s15 }
  0x6d   : > { %s1276_s9 = scalar_lea.vmem %s1275_s15, 256  ;;  %p1277_p5 = scmp.lt.s32.totalorder %s1850_s28, %s1275_s15 }
  0x6e   : > { %p1272_p0 = pnand %p1270_p8, %p1256_p10  ;;  %p1278_p9 = scmp.lt.s32.totalorder %s1276_s9, %s1269_s24 }
  0x70   : > { %p1273_p4 = pneg %p1272_p0  ;;  %p1279_p11 = por %p1278_p9, %p1277_p5 }
  0x72   : > { %p1280_p12 = pnand %p1279_p11, %p1273_p4 }
  0x74   : > { %1283 = shalt.err (!%p1280_p12)
}
  0x75   : > { %s2299_s22 = smov 64   ;;  %s2301_s27 = smov 4  }
  0x76   : > { %1024 = dma.hbm_to_vmem [thread:$0]  (!%p1846_p6), %s1840_s14, 128, %s1850_s28, %s1854_s4, %s2299_s22, %s2299_s22, %s2301_s27  }
  0x77   : > { %s1886_s8 = ssub.s32 %s1578_s10, %s2421_s3  ;;  %s64_s16 = sadd.s32 1, %s1566_s7 }
  0x78   : > { %s59_s24 = sor.u32 %s1886_s8, %s1811_s19  ;;  %p71_p5 = scmp.ne.s32.totalorder %s1566_s7, %s1562_s6 }
  0x79   : > { %p62_p4 = scmp.eq.s32.totalorder %s59_s24, 0  ;;  %p77_p10 = scmp.ne.s32.totalorder %s1562_s6, %s1558_s30 }
  0x7a   : > { %p2344_p7 = scmp.eq.s32.totalorder %s1586_s12, 0  ;;  %s251_s18 = sand.u32 1, %s1566_s7  }
  0x7b   : > { %s1899_s15 = scalar_select %p62_p4, %s1566_s7, %s64_s16  }
  0x7c   : > { %p73_p13 = por %p2344_p7, %p71_p5  ;;  %p2346_p2 = scmp.eq.s32.totalorder %s1734_s13, 0 }
  0x7d   : > { %2345 = sst [smem:[#allocation40_spill]] %s1899_s15  ;;  %s940_s9 = sshll.u32 %s251_s18, 3 }
  0x7e   : > { %p1903_p3 = por %p2346_p2, %p77_p10  ;;  %s2348_s0 = sld [smem:[#allocation41_spill]] }
  0x7f   : > { %p2349_p6 = scmp.lt.s32.totalorder %s1586_s12, 8  ;;  %s255_s16 = scalar_lea.vmem [#allocation6], %s940_s9 }
  0x80   : > { %s266_s24 = sshll.u32 %s255_s16, 4  ;;  %s1921_s22 = scalar_lea.sflag [#allocation7], %s251_s18  ;;  %s1919_s24 = int_to_ptr.vmem [resolvable:$true] %s266_s24 }
  0x81   : > { %p1915_p8 = pnand %p2349_p6, %p73_p13 }
  0x83   : > { %p1287_p9 = pneg %p1915_p8 }
  0x84   : > { %s1911_s23 = scalar_lea.hbm %s2348_s0, %s1833_s2  ;;  %s1290_s1 = scalar_lea.hbm %s2348_s0, 3072 }
  0x85   : > { %s1285_s28 = scalar_lea.hbm %s1911_s23, 128  ;;  %p1291_p5 = scmp.lt.u32.totalorder %s1911_s23, %s2348_s0 }
  0x86   : > { %p1286_p0 = scmp.ne.s32.totalorder %s1911_s23, %s1285_s28  ;;  %p1292_p4 = scmp.lt.u32.totalorder %s1290_s1, %s1285_s28 }
  0x87   : > { %p1294_p7 = scmp.lt.u32.totalorder %s1285_s28, %s1911_s23 }
  0x88   : > { %p1288_p11 = pnand %p1287_p9, %p1286_p0  ;;  %p1293_p10 = por %p1292_p4, %p1291_p5 }
  0x8a   : > { %p1289_p12 = pneg %p1288_p11  ;;  %p1295_p13 = por %p1294_p7, %p1293_p10 }
  0x8c   : > { %p1296_p2 = pnand %p1295_p13, %p1289_p12 }
  0x8e   : > { %1299 = shalt.err (!%p1296_p2)
}
  0x8f   : > { %s1300_s18 = scalar_lea.vmem %s1919_s24, 128  ;;  %s1592_s27 = smov [#allocation6]  }
  0x90   : > { %p1301_p6 = scmp.ne.s32.totalorder %s1919_s24, %s1300_s18  ;;  %s1305_s9 = sshll.u32 %s1592_s27, 4  ;;  %s1306_s9 = int_to_ptr.vmem [resolvable:$false] %s1305_s9 }
  0x91   : > { %s1307_s11 = scalar_lea.vmem %s1306_s9, 256  ;;  %p1308_p1 = scmp.lt.s32.totalorder %s1919_s24, %s1306_s9 }
  0x92   : > { %p1303_p0 = pnand %p1301_p6, %p1287_p9  ;;  %p1309_p5 = scmp.lt.s32.totalorder %s1307_s11, %s1300_s18 }
  0x94   : > { %p1304_p11 = pneg %p1303_p0  ;;  %p1310_p4 = por %p1309_p5, %p1308_p1 }
  0x96   : > { %p1311_p10 = pnand %p1310_p4, %p1304_p11 }
  0x98   : > { %1314 = shalt.err (!%p1311_p10)
}
  0x99   : > { %s2351_s1 = smov 4   ;;  %s2352_s3 = smov 64  }
  0x9a   : > { %s2353_s16 = sld [smem:[#allocation27_spill]]  ;;  %s2354_s30 = sor.u32 %s1816_s17, %s1811_s19 }
  0x9b   : > { %1021 = dma.hbm_to_vmem [thread:$0]  (!%p1915_p8), %s1911_s23, 128, %s1919_s24, %s1921_s22, %s2352_s3, %s2352_s3, %s2351_s1  }
  0x9c   : > { %p126_p1 = scmp.eq.s32.totalorder %s2354_s30, 0  ;;  %s128_s28 = sadd.s32 1, %s1542_s26 }
  0x9d   : > { %p135_p9 = scmp.ne.s32.totalorder %s1542_s26, %s1538_s25  ;;  %p2355_p12 = scmp.eq.s32.totalorder %s1586_s12, 0 }
  0x9e   : > { %s1959_s14 = scalar_select %p126_p1, %s1542_s26, %s128_s28  }
  0x9f   : > { %p137_p7 = por %p135_p9, %p2355_p12  ;;  %s304_s18 = sand.u32 1, %s1542_s26  }
  0xa0   : > { %p141_p13 = scmp.ne.s32.totalorder %s1538_s25, %s2353_s16  ;;  %s2356_s11 = sld [smem:[#allocation43_spill]] }
  0xa1   : > { %p2358_p2 = scmp.eq.s32.totalorder %s1734_s13, 0  ;;  %s946_s23 = sshll.u32 %s304_s18, 3 }
  0xa2   : > { %s306_s17 = scalar_lea.vmem [#allocation11], %s946_s23  ;;  %p2360_p8 = scmp.lt.s32.totalorder %s1586_s12, 8 }
  0xa3   : > { %p1972_p6 = por %p141_p13, %p2358_p2  ;;  %s318_s22 = sshll.u32 %s306_s17, 4  ;;  %s1984_s22 = int_to_ptr.vmem [resolvable:$true] %s318_s22 }
  0xa4   : > { %p1980_p0 = pnand %p2360_p8, %p137_p7 }
  0xa5   : > { %s2359_s7 = scalar_select %p1972_p6, 1, 0 }
  0xa6   : > { %s2357_s0 = smov %s2356_s11  ;;  %s813_s15 = scalar_lea.hbm %s2356_s11, %s1833_s2 }
  0xa7   : > { %s1976_s19 = scalar_lea.hbm %s813_s15, 1024  ;;  %s1345_s2 = scalar_lea.hbm %s813_s15, 1152 }
  0xa8   : > { %p1316_p11 = scmp.ne.s32.totalorder %s1976_s19, %s1345_s2  ;;  %p1317_p5 = pneg %p1980_p0 }
  0xa9   : > { %s1320_s28 = scalar_lea.hbm %s2357_s0, 3072  ;;  %p1321_p1 = scmp.lt.u32.totalorder %s1976_s19, %s2357_s0 }
  0xaa   : > { %p1318_p4 = pnand %p1317_p5, %p1316_p11  ;;  %p1322_p9 = scmp.lt.u32.totalorder %s1320_s28, %s1345_s2 }
  0xab   : > { %p1324_p7 = scmp.lt.u32.totalorder %s1345_s2, %s1976_s19 }
  0xac   : > { %p1319_p10 = pneg %p1318_p4  ;;  %p1323_p12 = por %p1322_p9, %p1321_p1 }
  0xae   : > { %p1325_p13 = por %p1324_p7, %p1323_p12 }
  0xb0   : > { %p1326_p2 = pnand %p1325_p13, %p1319_p10 }
  0xb2   : > { %1329 = shalt.err (!%p1326_p2)
}
  0xb3   : > { %s1330_s15 = scalar_lea.vmem %s1984_s22, 128  ;;  %s1593_s9 = smov [#allocation11]  }
  0xb4   : > { %p1331_p8 = scmp.ne.s32.totalorder %s1984_s22, %s1330_s15  ;;  %s1335_s11 = sshll.u32 %s1593_s9, 4  ;;  %s1336_s11 = int_to_ptr.vmem [resolvable:$false] %s1335_s11 }
  0xb5   : > { %s1337_s23 = scalar_lea.vmem %s1336_s11, 256  ;;  %p1338_p6 = scmp.lt.s32.totalorder %s1984_s22, %s1336_s11 }
  0xb6   : > { %p1333_p11 = pnand %p1331_p8, %p1317_p5  ;;  %p1339_p1 = scmp.lt.s32.totalorder %s1337_s23, %s1330_s15 }
  0xb8   : > { %p1334_p4 = pneg %p1333_p11  ;;  %p1340_p9 = por %p1339_p1, %p1338_p6 }
  0xba   : > { %p1341_p12 = pnand %p1340_p9, %p1334_p4 }
  0xbc   : > { %1344 = shalt.err (!%p1341_p12)
}
  0xbd   : > { %s2362_s17 = sld [smem:[#allocation26_spill]]  ;;  %s2363_s2 = sld [smem:[#allocation25_spill]] }
  0xbe   : > { %s2364_s16 = sld [smem:[#allocation24_spill]]  ;;  %p152_p6 = scmp.eq.s32.totalorder %s1886_s8, 0 }
  0xbf   : > { %1027 = dma.hbm_to_vmem [thread:$0]  (!%p1980_p0), %s1976_s19, 128, %s1984_s22, %s1854_s4, %s2352_s3, %s2352_s3, %s2351_s1  }
  0xc0   : > { %p2365_p7 = scmp.eq.s32.totalorder %s1586_s12, 0  ;;  %p2366_p2 = scmp.eq.s32.totalorder %s1734_s13, 0 }
  0xc1   : > { %s950_s15 = sshll.u32 %s1578_s10, 6  ;;  %s2368_s4 = sld [smem:[#allocation44_spill]] }
  0xc2   : > { %p2369_p0 = scmp.lt.s32.totalorder %s1586_s12, 8  ;;  %s2371_s22 = sand.u32 1, %s1586_s12  }
  0xc3   : > { %s154_s24 = sadd.s32 1, %s2362_s17  ;;  %p161_p5 = scmp.ne.s32.totalorder %s2362_s17, %s2363_s2 }
  0xc4   : > { %p167_p10 = scmp.ne.s32.totalorder %s2363_s2, %s2364_s16  ;;  %s330_s18 = sand.u32 1, %s2362_s17  }
  0xc5   : > { %s2021_s30 = scalar_select %p152_p6, %s2362_s17, %s154_s24  }
  0xc6   : > { %p163_p13 = por %p161_p5, %p2365_p7  ;;  %p2027_p8 = por %p167_p10, %p2366_p2 }
  0xc7   : > { %s949_s27 = sshll.u32 %s330_s18, 2  ;;  %s2036_s1 = scalar_lea.hbm %s2368_s4, %s950_s15 }
  0xc8   : > { %s2367_s28 = scalar_select %p2027_p8, 1, 0 }
  0xc9   : > { %s332_s8 = scalar_lea.vmem [#allocation12], %s949_s27  ;;  %p2040_p11 = pnand %p2369_p0, %p163_p13 }
  0xca   : > { %s339_s3 = sshll.u32 %s332_s8, 4  ;;  %s329_s23 = scalar_lea.sflag [#allocation13], %s2371_s22  ;;  %s2044_s3 = int_to_ptr.vmem [resolvable:$true] %s339_s3 }
  0xcb   : > { %s1346_s17 = scalar_lea.hbm %s2036_s1, 64  ;;  %p1348_p1 = pneg %p2040_p11 }
  0xcc   : > { %p1347_p4 = scmp.ne.s32.totalorder %s2036_s1, %s1346_s17  ;;  %s1351_s24 = scalar_lea.hbm %s2368_s4, 256 }
  0xcd   : > { %p1352_p6 = scmp.lt.u32.totalorder %s2036_s1, %s2368_s4  ;;  %p1353_p5 = scmp.lt.u32.totalorder %s1351_s24, %s1346_s17 }
  0xce   : > { %p1349_p9 = pnand %p1348_p1, %p1347_p4  ;;  %p1355_p7 = scmp.lt.u32.totalorder %s1346_s17, %s2036_s1 }
  0xcf   : > { %p1354_p10 = por %p1353_p5, %p1352_p6 }
  0xd0   : > { %p1350_p12 = pneg %p1349_p9 }
  0xd1   : > { %p1356_p13 = por %p1355_p7, %p1354_p10 }
  0xd3   : > { %p1357_p2 = pnand %p1356_p13, %p1350_p12 }
  0xd5   : > { %1360 = shalt.err (!%p1357_p2)
}
  0xd6   : > { %s1361_s15 = scalar_lea.vmem %s2044_s3, 64  ;;  %s1594_s9 = smov [#allocation12]  }
  0xd7   : > { %p1362_p0 = scmp.ne.s32.totalorder %s2044_s3, %s1361_s15  ;;  %s1366_s11 = sshll.u32 %s1594_s9, 4  ;;  %s1367_s11 = int_to_ptr.vmem [resolvable:$false] %s1366_s11 }
  0xd8   : > { %s1368_s8 = scalar_lea.vmem %s1367_s11, 128  ;;  %p1369_p8 = scmp.lt.s32.totalorder %s2044_s3, %s1367_s11 }
  0xd9   : > { %p1364_p4 = pnand %p1362_p0, %p1348_p1  ;;  %p1370_p6 = scmp.lt.s32.totalorder %s1368_s8, %s1361_s15 }
  0xdb   : > { %p1365_p9 = pneg %p1364_p4  ;;  %p1371_p5 = por %p1370_p6, %p1369_p8 }
  0xdd   : > { %p1372_p10 = pnand %p1371_p5, %p1365_p9 }
  0xdf   : > { %1375 = shalt.err (!%p1372_p10)
}
  0xe0   : > { %1030 = dma.hbm_to_vmem [thread:$0]  (!%p2040_p11), %s2036_s1, 64, %s2044_s3, %s329_s23  }
  0xe1   : > { %s2372_s22 = sld [smem:[#allocation35_spill]] }
  0xe7   : > { %p2373_p12 = scmp.ne.s32.totalorder %s2372_s22, 0 }
  0xe8   : > { %s350_s17 = sand.u32 (!%p2373_p12), 1, %s1562_s6  }
  0xe9   : > { %348 = sbr.rel (%p2373_p12) target bundleno = 1347 (0x543), region = 40  ;;  %s2076_s2 = sshll.u32 (!%p2373_p12), %s350_s17, 3 }
  0xea   : > { %s351_s16 = scalar_lea.sflag (!%p2373_p12), [#allocation7], %s350_s17  ;;  %s354_s24 = scalar_lea.vmem (!%p2373_p12), [#allocation6], %s2076_s2 }
  0xf0   : > { %1485 = dma.done.wait (%p1903_p3), %s351_s16, 128  }
  0xf1   : > { %1487 = vsyncadd (%p1903_p3), %s351_s16, 4294967168  ;;  %s2374_s19 = sld [smem:[#allocation28_spill]]  ;;  %s2375_s18 = sld [smem:[#allocation38_spill]] }
  0xf2   : > { %s359_s1 = sand.u32 1, %s1734_s13  }
  0xf3   : > { %s360_s27 = scalar_lea.sflag [#allocation10], %s359_s1 }
  0xf7   : > { %s361_s3 = sand.u32 1, %s2374_s19   ;;  %p2376_p8 = scmp.ne.s32.totalorder %s2375_s18, 0 }
  0xf8   : > { %s2085_s23 = sshll.u32 %s361_s3, 3 }
  0xf9   : > { %s363_s15 = scalar_lea.vmem [#allocation9], %s2085_s23 }
  0xfa   : > { %1489 = dma.done.wait (%p2376_p8), %s360_s27, 128  }
  0xfb   : > { %1491 = vsyncadd (%p2376_p8), %s360_s27, 4294967168  ;;  %s370_s9 = sand.u32 1, %s1538_s25   ;;  %p2377_p3 = scmp.ne.s32.totalorder %s2359_s7, 0 }
  0xfc   : > { %s2093_s21 = sshll.u32 %s370_s9, 3 }
  0xfd   : > { %s372_s11 = scalar_lea.vmem [#allocation11], %s2093_s21 }
  0xfe   : > { %1493 = dma.done.wait (%p2377_p3), %s360_s27, 128  }
  0xff   : > { %1495 = vsyncadd (%p2377_p3), %s360_s27, 4294967168  ;;  %s2378_s8 = sld [smem:[#allocation25_spill]]  ;;  %s378_s16 = scalar_lea.sflag [#allocation13], %s359_s1 }
 0x100   : > { %p2379_p11 = scmp.ne.s32.totalorder %s2367_s28, 0 }
 0x105   : > { %s379_s22 = sand.u32 1, %s2378_s8  }
 0x106   : > { %s2101_s17 = sshll.u32 %s379_s22, 2 }
 0x107   : > { %s381_s19 = scalar_lea.vmem [#allocation12], %s2101_s17 }
 0x108   : > { %1497 = dma.done.wait (%p2379_p11), %s378_s16, 64  }
 0x109   : > { %1499 = vsyncadd (%p2379_p11), %s378_s16, 4294967232  ;;  %p2380_p1 = scmp.eq.s32.totalorder %s1734_s13, 0 }
 0x10b   : > { %1501 = dma.done.wait (%p2380_p1), [#allocation13], 16   ;;  %p2381_p7 = pmov %p2380_p1 }
 0x10c   : > { %s2382_s7 = sld [smem:[#allocation23_spill]]  ;;  %s2383_s18 = sld [smem:[#allocation30_spill]]  ;;  %vm438_vm0 = vcmask 7168   ;;  %v1595_v0 = vmov -inf   ;;  %vm443_vm1 = vcmask 64512   ;;  %v1596_v1 = vmov 0.0  }
 0x10d   : > { %1503 = vsyncadd (%p2381_p7), [#allocation13], 4294967280  ;;  %439 = vst.msk [vmem:[#allocation2] sm:$0xff] %vm438_vm0, %v1595_v0 }
 0x10e   : > { %440 = vst.msk [vmem:[#allocation2 + $0x8] sm:$0xff] %vm438_vm0, %v1595_v0  ;;  %441 = vst.msk [vmem:[#allocation3] sm:$0xff] %vm438_vm0, %v1596_v1 }
 0x10f   : > { %442 = vst.msk [vmem:[#allocation3 + $0x8] sm:$0xff] %vm438_vm0, %v1596_v1 }
 0x110   : > { %444 = vst.msk [vmem:[#allocation4] sm:$0xff] %vm443_vm1, %v1596_v1  ;;  %445 = vst.msk [vmem:[#allocation4 + $0x8] sm:$0xff] %vm443_vm1, %v1596_v1 }
 0x112   : > { %s424_s3 = sand.u32 1, %s2382_s7   ;;  %p446_p13 = scmp.eq.s32.totalorder %s2383_s18, 0 }
 0x113   : > { %s957_s1 = sshll.u32 %s424_s3, 4  ;;  %vm451_vm2 = vcmask (%p446_p13), 261120   ;;  %v1597_v2 = vmov (%p446_p13), 0.0  }
 0x114   : > { %s2126_s13 = scalar_lea.vmem [#allocation15], %s957_s1  ;;  %450 = sbr.rel (!%p446_p13) target bundleno = 283 (0x11b), region = 68  ;;  %452 = vst.msk [vmem:[#allocation5] sm:$0xff] (%p446_p13), %vm451_vm2, %v1597_v2  ;;  %453 = vst.msk [vmem:[#allocation5 + $0x8] sm:$0xff] (%p446_p13), %vm451_vm2, %v1597_v2 }
 0x11b PF: > { %981 = vmatprep.subr.bf16.mxu0 %v1596_v1  ;;  %v1211_v3 = vld [vmem:[%s363_s15] sm:$0xff]   ;;  %987 = vmatprep.subr.bf16.mxu1 %v1596_v1  ;;  %vm1598_vm3 = vmmov 0   ;;  %v1212_v5 = vld [vmem:[%s354_s24] sm:$0xff]   ;;  %vm518_vm4 = vcmask 130048   ;;  %v1599_v12 = vmov 0   ;;  %vm665_vm5 = vcmask 1043456  }
 0x11c   : > { %983 = vmatprep.mubr.msk.bf16.mxu0 %vm1598_vm3, %v1596_v1  ;;  %989 = vmatprep.mubr.msk.bf16.mxu1 %vm1598_vm3, %v1596_v1  ;;  %v473_v4 = vsel %vm443_vm1, %v1211_v3, 0  ;;  %v516_v13 = vld [vmem:[#allocation2] sm:$0xff]  ;;  %v517_v16 = vld [vmem:[#allocation2 + $0x8] sm:$0xff]  ;;  %v549_v37 = vld [vmem:[#allocation3] sm:$0xff]  ;;  %s2384_s28 = sld [smem:[#allocation30_spill]]  ;;  %vm712_vm6 = vcmask 261120  }
 0x11d   : > { %982 = vmatpush3.bf16.xpose.msra.mxu0 %v473_v4  ;;  %1209 = vset.pattern.permute.xlu1 %v1599_v12  ;;  %v1213_v21 = vld [vmem:[%s372_s11] sm:$0xff]   ;;  %v550_v40 = vld [vmem:[#allocation3 + $0x8] sm:$0xff]  ;;  %v661_v48 = vld [vmem:[%s381_s19] sm:$0xf] }
 0x11e   : > { %1210 = vset.pattern.permute.xlu0 %v1599_v12  ;;  %988 = vmatpush3.bf16.msra.mxu1 %v1213_v21  ;;  %v667_v49 = vsel %vm665_vm5, %v661_v48, 0  ;;  %v564_v51 = vld [vmem:[#allocation4] sm:$0xff]  ;;  %v565_v53 = vld [vmem:[#allocation4 + $0x8] sm:$0xff] }
 0x11f   : > { %993 = vmatprep.subr.bf16.mxu1 %v1596_v1 }
 0x122   : > { %p715_p2 = scmp.eq.s32.totalorder %s2384_s28, 3 }
 0x124   : > { %984 = vmatmul.mubr.msk.bf16.vlgmr.msra.gmra.mrb[0].mxu0 %vm443_vm1, %v1212_v5 }
 0x1f7   : > { %v509_v6 = vpop.f32.mrb[0].mxu0 }
 0x1f8   : > { %v985_v7 = vpop.f32.mrb[1].mxu0  ;;  %v519_v8 = vsel %vm518_vm4, %v509_v6, -inf }
 0x1f9   : > { %520 = vmax.xlane.f32.xlu0 %v519_v8  ;;  %v512_v9 = vpop.f32.mrb[2].mxu0  ;;  %v660_v8 = vld [vmem:[#allocation5 + $0x8] sm:$0xff] }
 0x1fa   : > { %v986_v10 = vpop.f32.mrb[3].mxu0  ;;  %v522_v11 = vsel %vm518_vm4, %v512_v9, -inf }
 0x1fd   : > { %523 = vmax.xlane.f32.xlu0 %v522_v11 }
 0x286   : > { %v521_v14 = vpop.xlane.xlu0 %520 }
 0x287   : > { %v525_v15 = vmax.f32 %v516_v13, %v521_v14 }
 0x289   : > { %v527_v17 = vsub.f32 %v516_v13, %v525_v15  ;;  %635 = vst.msk [vmem:[#allocation2] sm:$0xff] %vm438_vm0, %v525_v15  ;;  %535 = vperm.xlu1 %1209, %v525_v15   ;;  %v966_v15 = vld [vmem:[#allocation14] ss:$0 sm:$0xff] (%p715_p2) }
 0x28a   : > { %v524_v18 = vpop.xlane.xlu0 %523 }
 0x28b   : > { %v526_v19 = vmax.f32 %v517_v16, %v524_v18  ;;  %v529_v34 = vmul.f32 1.442695, %v527_v17 }
 0x28d   : > { %v528_v20 = vsub.f32 %v517_v16, %v526_v19  ;;  %636 = vst.msk [vmem:[#allocation2 + $0x8] sm:$0xff] %vm438_vm0, %v526_v19  ;;  %540 = vperm.xlu1 %1209, %v526_v19  }
 0x28f   : > { %v531_v33 = vmul.f32 1.442695, %v528_v20 }
 0x308   : > { %v536_v22 = vpop.permute.xlu1 %535 }
 0x309   : > { %v543_v23 = vsub.f32 %v509_v6, %v536_v22  ;;  %v659_v6 = vld [vmem:[#allocation5] sm:$0xff] }
 0x30b   : > { %v545_v24 = vmul.f32 1.442695, %v543_v23 }
 0x30c   : > { %v541_v25 = vpop.permute.xlu1 %540 }
 0x30d   : > { %1214 = vpow2.f32 %v545_v24  ;;  %v544_v26 = vsub.f32 %v512_v9, %v541_v25 }
 0x30f   : > { %v547_v27 = vmul.f32 1.442695, %v544_v26 }
 0x311   : > { %1216 = vpow2.f32 %v547_v27 }
 0x312   : > { %1218 = vpow2.f32 %v531_v33 }
 0x313   : > { %1220 = vpow2.f32 %v529_v34 }
 0x317   : > { %v1215_v28 = vpop.eup %1214 }
 0x318   : > { %v553_v29 = vsel %vm518_vm4, %v1215_v28, 0.0 }
 0x319   : > { %554 = vadd.xlane.f32.xlu0 %v553_v29 }
 0x31b   : > { %v1217_v30 = vpop.eup %1216 }
 0x31c   : > { %v556_v31 = vsel %vm518_vm4, %v1217_v30, 0.0  ;;  %v578_v32 = vpack.c.bf16 %v1217_v30, %v1215_v28  ;;  %v1219_v35 = vpop.eup %1218 }
 0x31d   : > { %557 = vadd.xlane.f32.xlu1 %v556_v31  ;;  %v1221_v36 = vpop.eup %1220  ;;  %v552_v42 = vmul.f32 %v1219_v35, %v550_v40 }
 0x31e   : > { %990 = vmatmul.mubr.msk.bf16.vlgmr.msra.gmra.mrb[0].mxu1 %vm518_vm4, %v578_v32  ;;  %v551_v38 = vmul.f32 %v1221_v36, %v549_v37 }
 0x31f   : > { %995 = vmatprep.mubr.msk.bf16.mxu1 %vm1598_vm3, %v1596_v1  ;;  %994 = vmatpush3.bf16.msra.mxu1 %v667_v49 }
 0x32e   : > { %573 = vperm.xlu1 %1209, %v1219_v35  }
 0x32f   : > { %568 = vperm.xlu0 %1210, %v1221_v36  }
 0x3a6   : > { %v555_v39 = vpop.xlane.xlu0 %554 }
 0x3a7   : > { %v559_v41 = vadd.f32 %v555_v39, %v551_v38 }
 0x3a9   : > { %562 = vst.msk [vmem:[#allocation3] sm:$0xff] %vm438_vm0, %v559_v41 }
 0x3aa   : > { %v558_v43 = vpop.xlane.xlu1 %557 }
 0x3ab   : > { %v560_v44 = vadd.f32 %v558_v43, %v552_v42 }
 0x3ad   : > { %563 = vst.msk [vmem:[#allocation3 + $0x8] sm:$0xff] %vm438_vm0, %v560_v44 }
 0x3ae   : > { %v569_v52 = vpop.permute.xlu0 %568  ;;  %v574_v54 = vpop.permute.xlu1 %573 }
 0x3af   : > { %v576_v55 = vmul.f32 %v569_v52, %v564_v51  ;;  %v577_v57 = vmul.f32 %v574_v54, %v565_v53 }
 0x3b0   : > { %v640_v45 = vld [vmem:[#allocation3] sm:$0xff] }
 0x3b1   : > { %1222 = vrcp.f32 %v640_v45 }
 0x3b4   : > { %v641_v46 = vld [vmem:[#allocation3 + $0x8] sm:$0xff] }
 0x3b5   : > { %1224 = vrcp.f32 %v641_v46 }
 0x3bb   : > { %v1223_v47 = vpop.eup %1222 }
 0x3bc   : > { %648 = vperm.xlu0 %1210, %v1223_v47  }
 0x3bf   : > { %v1225_v50 = vpop.eup %1224 }
 0x3c0   : > { %653 = vperm.xlu0 %1210, %v1225_v50  }
 0x3f1   : > { %v624_v56 = vpop.f32.mrb[0].mxu1 }
 0x3f2   : > { %v631_v58 = vadd.f32 %v624_v56, %v576_v55  ;;  %v991_v59 = vpop.f32.mrb[1].mxu1 }
 0x3f3   : > { %v627_v60 = vpop.f32.mrb[2].mxu1 }
 0x3f4   : > { %633 = vst.msk [vmem:[#allocation4] sm:$0xff] %vm443_vm1, %v631_v58  ;;  %v632_v61 = vadd.f32 %v627_v60, %v577_v57  ;;  %v992_v62 = vpop.f32.mrb[3].mxu1 }
 0x3f6   : > { %634 = vst.msk [vmem:[#allocation4 + $0x8] sm:$0xff] %vm443_vm1, %v632_v61 }
 0x3fb   : > { %v644_v0 = vld [vmem:[#allocation4] sm:$0xff] }
 0x3fd   : > { %v645_v1 = vld [vmem:[#allocation4 + $0x8] sm:$0xff] }
 0x43b   : > { %v649_v63 = vpop.permute.xlu0 %648 }
 0x43c   : > { %v656_v3 = vmul.f32 %v649_v63, %v644_v0 }
 0x43f   : > { %v654_v2 = vpop.permute.xlu0 %653 }
 0x440   : > { %v657_v4 = vmul.f32 %v654_v2, %v645_v1 }
 0x442   : > { %v658_v5 = vpack.c.bf16 %v657_v4, %v656_v3 }
 0x444   : > { %996 = vmatmul.mubr.msk.bf16.vlgmr.msra.gmra.mrb[4].mxu1 %vm443_vm1, %v658_v5 }
 0x516   : > { %719 = sbr.rel (!%p715_p2) target bundleno = 1319 (0x527), region = 76 }
 0x517   : > { %v703_v7 = vpop.f32.mrb[4].mxu1 }
 0x518   : > { %v710_v9 = vadd.f32 %v703_v7, %v659_v6  ;;  %v997_v10 = vpop.f32.mrb[5].mxu1 }
 0x519   : > { %v706_v11 = vpop.f32.mrb[6].mxu1 }
 0x51a   : > { %713 = vst.msk [vmem:[#allocation5] sm:$0xff] %vm712_vm6, %v710_v9  ;;  %v711_v12 = vadd.f32 %v706_v11, %v660_v8  ;;  %v998_v13 = vpop.f32.mrb[7].mxu1 }
 0x51c   : > { %714 = vst.msk [vmem:[#allocation5 + $0x8] sm:$0xff] %vm712_vm6, %v711_v12 }
 0x521   : > { %v720_v14 = vld [vmem:[#allocation5] sm:$0xff] }
 0x522   : > { %v729_v17 = vadd.f32 %v966_v15, %v720_v14 }
 0x523   : > { %v721_v16 = vld [vmem:[#allocation5 + $0x8] sm:$0xff] }
 0x524   : > { %v730_v18 = vadd.f32 %v966_v15, %v721_v16  ;;  %732 = vst.msk [vmem:[%s2126_s13] sm:$0xff] %vm712_vm6, %v729_v17 }
 0x526   : > { %733 = vst.msk [vmem:[%s2126_s13 + $0x8] sm:$0xff] %vm712_vm6, %v730_v18 }
 0x527 PF: > { %s2385_s2 = sld [smem:[#allocation31_spill]]  ;;  %s2387_s23 = sld [smem:[#allocation33_spill]] }
 0x528   : > { %s2388_s21 = sld [smem:[#allocation46_spill]]  ;;  %s750_s8 = sshll.u32 %s2126_s13, 4  ;;  %s2173_s8 = int_to_ptr.vmem [resolvable:$true] %s750_s8 }
 0x529   : > { %s2177_s22 = scalar_lea.sflag [#allocation8], %s424_s3  ;;  %s1376_s16 = scalar_lea.vmem %s2173_s8, 256 }
 0x52a   : > { %p1377_p0 = scmp.ne.s32.totalorder %s2173_s8, %s1376_s16  ;;  %s1600_s19 = smov [#allocation15]  }
 0x52b   : > { %s1380_s7 = sshll.u32 %s1600_s19, 4  ;;  %s1381_s7 = int_to_ptr.vmem [resolvable:$false] %s1380_s7 }
 0x52c   : > { %s1382_s18 = scalar_lea.vmem %s1381_s7, 512  ;;  %p1383_p5 = scmp.lt.s32.totalorder %s2173_s8, %s1381_s7 }
 0x52d   : > { %s974_s27 = sshll.u32 %s2385_s2, 8  ;;  %p2390_p4 = scmp.ne.s32.totalorder %s2387_s23, 0 }
 0x52e   : > { %s2389_s17 = smov %s2388_s21  ;;  %s2170_s11 = scalar_lea.hbm %s2388_s21, %s974_s27 }
 0x52f   : > { %p1378_p9 = pnand %p1377_p0, %p2390_p4  ;;  %p1384_p10 = scmp.lt.s32.totalorder %s1382_s18, %s1376_s16 }
 0x531   : > { %p1379_p6 = pneg %p1378_p9  ;;  %p1385_p12 = por %p1384_p10, %p1383_p5 }
 0x533   : > { %p1386_p8 = pnand %p1385_p12, %p1379_p6 }
 0x535   : > { %1389 = shalt.err (!%p1386_p8)
}
 0x536   : > { %s1390_s3 = scalar_lea.hbm %s2170_s11, 256  ;;  %s1394_s28 = scalar_lea.hbm %s2389_s17, 512 }
 0x537   : > { %p1391_p3 = scmp.ne.s32.totalorder %s2170_s11, %s1390_s3  ;;  %p1395_p7 = scmp.lt.u32.totalorder %s2170_s11, %s2389_s17 }
 0x538   : > { %p1396_p13 = scmp.lt.u32.totalorder %s1394_s28, %s1390_s3  ;;  %p1398_p0 = scmp.lt.u32.totalorder %s1390_s3, %s2170_s11 }
 0x539   : > { %p1392_p11 = pnand %p1391_p3, %p2390_p4 }
 0x53a   : > { %p1397_p2 = por %p1396_p13, %p1395_p7 }
 0x53b   : > { %p1393_p1 = pneg %p1392_p11 }
 0x53c   : > { %p1399_p9 = por %p1398_p0, %p1397_p2 }
 0x53e   : > { %p1400_p6 = pnand %p1399_p9, %p1393_p1 }
 0x540   : > { %1403 = shalt.err (!%p1400_p6)
}
 0x541   : > { %s1601_s27 = smov 128   ;;  %s1602_s15 = smov 8  }
 0x542   : > { %1012 = dma.vmem_to_hbm [thread:$0]  (%p2390_p4), %s2173_s8, 256, %s2170_s11, %s2177_s22, %s1601_s27, %s1601_s27, %s1602_s15  }
 0x543 PF: > { %s2391_s9 = sld [smem:[#allocation22_spill]]  ;;  %s2392_s21 = sld [smem:[#allocation34_spill]] }
 0x544   : > { %p1038_p5 = scmp.ge.s32.totalorder %s1586_s12, 2 }
 0x549   : > { %s765_s16 = sand.u32 1, %s2391_s9   ;;  %p2393_p10 = scmp.ne.s32.totalorder %s2392_s21, 0 }
 0x54a   : > { %s766_s19 = scalar_lea.sflag [#allocation8], %s765_s16 }
 0x54b   : > { %p1032_p12 = pnand %p1038_p5, %p2393_p10 }
 0x54d   : > { %1505 = dma.done.wait (!%p1032_p12), %s766_s19, 256  }
 0x54e   : > { %1507 = vsyncadd (!%p1032_p12), %s766_s19, 4294967040  ;;  %s27_s12 = sadd.s32 1, %s1586_s12   ;;  %s2395_s18 = sld [smem:[#allocation23_spill]] }
 0x54f   : > { %p2206_p8 = scmp.ge.s32.totalorder %s27_s12, 10   ;;  %s2396_s21 = sld [smem:[#allocation25_spill]] }
 0x550   : > { %s2397_s22 = sld [smem:[#allocation26_spill]]  ;;  %s2398_s27 = sld [smem:[#allocation28_spill]] }
 0x551   : > { %s2399_s11 = sld [smem:[#allocation39_spill]]  ;;  %s2400_s8 = sld [smem:[#allocation29_spill]] }
 0x552   : > { %s2401_s3 = sld [smem:[#allocation40_spill]]  ;;  %s2402_s9 = sld [smem:[#allocation32_spill]] }
 0x553   : > { %s2403_s19 = smov %s1518_s20  ;;  %s2404_s1 = sld [smem:[#allocation36_spill]] }
 0x554   : > { %s2405_s20 = smov %s1827_s5  ;;  %s2406_s13 = sld [smem:[#allocation37_spill]] }
 0x555   : > { %s2408_s23 = smov %s2021_s30  ;;  %s2409_s24 = smov %s1538_s25 }
 0x556   : > { %s2410_s25 = smov %s1542_s26  ;;  %s2411_s26 = smov %s1959_s14 }
 0x557   : > { %s2412_s28 = smov %s1554_s29  ;;  %s2413_s29 = smov %s2399_s11 }
 0x558   : > { %s2414_s30 = smov %s1562_s6  ;;  %s2415_s6 = smov %s2400_s8 }
 0x559   : > { %s2416_s7 = smov %s2401_s3  ;;  %s2417_s8 = smov %s1578_s10 }
 0x55a   : > { %s2418_s10 = smov %s2404_s1  ;;  %s2419_s11 = smov %s2406_s13 }
 0x55b   :  { %26 = sbr.rel (!%p2206_p8) target bundleno = 24 (0x18), region = 142 }
 0x562   :  { %771 = vsyncpa [#allocation7], 1 }
 0x563   :  { %773 = vsyncpa [#allocation7 + $0x1], 1 }
 0x564   :  { %774 = vsyncpa [#allocation10], 1 }
 0x565   :  { %776 = vsyncpa [#allocation10 + $0x1], 1 }
 0x566   :  { %777 = vsyncpa [#allocation13], 1 }
 0x567   :  { %779 = vsyncpa [#allocation13 + $0x1], 1 }
 0x568   :  { %780 = vsyncpa [#allocation8], 1 }
 0x569   :  { %782 = vsyncpa [#allocation8 + $0x1], 1 }

</bundles_post_ra>
